<compile_context>
chip_gen: v7x
topology: tpu7x:2x2x1
jax: 0.10.0
libtpu: 0.0.40
codegen_flags: <defaults>
</compile_context>

<pallas_src>
import functools
import math

import numpy as np
import jax
import jax.numpy as jnp
from jax import lax
from jax.experimental import pallas as pl
from jax.experimental.pallas import tpu as pltpu


# ---------------------------------------------------------------------------
# RelativeSinusoidalEmbeddings table (non-trainable), NumPy mirror of the
# PyTorch __init__ (including int-truncation and negative-index wrap).
# ---------------------------------------------------------------------------
def relative_sinusoidal_embeddings(window_size: int, overlap: float) -> np.ndarray:
    Mo = int(window_size * (overlap + 1))
    C = 2 * window_size - 1
    D = 2 * Mo - 1
    B = np.zeros((C, D), dtype=np.float32)
    positions = np.arange(C, dtype=np.float32)[:, None]
    divisor = np.exp(
        (np.arange(0, D, 2).astype(np.float32) * np.float32(-math.log(10000.0) / D))
    ).astype(np.float32)
    angles = positions * divisor
    B[:, 0::2] = np.sin(angles)
    if B.shape[0] % 2 == 0 and B.shape[1] % 2 == 0:
        B[:, 1::2] = np.cos(angles)
    else:
        B[:, 1::2] = np.cos(angles[:, :-1])
    xrows = np.arange(1, window_size + 1, 1.0 / window_size)[: window_size * window_size]
    xcols = np.arange(1, Mo + 1, 1.0 / Mo)[: Mo * Mo]
    xi = (xcols[None, :] - xrows[:, None]).astype(np.int64)  # trunc toward 0 == .int()
    yrows = np.tile(np.arange(1, window_size + 1), window_size)
    ycols = np.tile(np.arange(1, Mo + 1), Mo)
    yi = (ycols[None, :] - yrows[:, None]).astype(np.int64)
    emb = B[xi, yi]  # negative indices wrap, same as torch advanced indexing
    return emb.astype(np.float32)  # (ws*ws, Mo*Mo)


# ---------------------------------------------------------------------------
# Fused band kernel: one grid step = (batch element, window row).
# ---------------------------------------------------------------------------
def _oca_band_kernel(xq_ref, xb_ref, kvmask_ref, w1q_ref, b1q_ref,
                     w1kv_ref, b1kv_ref, w2_ref, b2_ref, bias_ref,
                     o_ref, kv_s, *, C, nH):
    E = C // nH

    # Q projection of the row-major query band (scale folded into w1q / b1q).
    q = jnp.dot(xq_ref[0], w1q_ref[...],
                preferred_element_type=jnp.float32) + b1q_ref[...]      # (QT, C)

    # K/V projection of the padded band; zero the padding-ring positions after
    # the bias add so the fused projection matches nn.Unfold's zero padding of
    # the *projected* K/V maps (those columns stay valid in the softmax).
    kv = (jnp.dot(xb_ref[0], w1kv_ref[...], preferred_element_type=jnp.float32)
          + b1kv_ref[...]) * kvmask_ref[0]                               # (BT, 2C)
    kv_s[...] = kv            # explicit VMEM scratch: per-head slices = plain loads

    bias = bias_ref[...]      # (QT, BT): emb bias in-window, -1e30 out-of-window

    heads = []
    for h in range(nH):                                   # nH is tiny; unrolled
        qh = q[:, h * E:(h + 1) * E]                      # (QT, E)
        kh = kv_s[:, h * E:(h + 1) * E]                   # (BT, E)
        vh = kv_s[:, C + h * E:C + (h + 1) * E]           # (BT, E)
        sc = lax.dot_general(qh, kh, (((1,), (1,)), ((), ())),
                             preferred_element_type=jnp.float32)        # (QT, BT)
        sc = sc + bias
        sc = sc - jnp.max(sc, axis=-1, keepdims=True)
        p = jnp.exp(sc)                                   # masked cols underflow to 0
        inv = pl.reciprocal(jnp.sum(p, axis=-1, keepdims=True), approx=True)
        heads.append(jnp.dot(p * inv, vh, preferred_element_type=jnp.float32))
    att = jnp.concatenate(heads, axis=-1)                 # (QT, C), token-major

    y = jnp.dot(att, w2_ref[...], preferred_element_type=jnp.float32) + b2_ref[...]
    o_ref[0] = y.astype(o_ref.dtype)                      # one contiguous block


# ---------------------------------------------------------------------------
# Public forward (NCHW in / NCHW out, like the PyTorch module).
# ---------------------------------------------------------------------------
def overlapping_cross_attention(x_nchw, params, *, num_heads, window_size,
                                overlap_size):
    b, C, H, W = x_nchw.shape
    nH = num_heads
    E = C // nH
    ws = window_size
    Mo = int((1 + overlap_size) * ws)
    pad = int(overlap_size * ws / 2)
    Hp, Wp = H + 2 * pad, W + 2 * pad
    nW = H // ws
    QT = ws * W          # queries per window-row band (row-major token order)
    BT = Mo * Wp         # K/V band tokens (Mo padded rows x Wp padded cols)
    assert C % nH == 0 and H % ws == 0 and W % ws == 0
    assert (H + 2 * pad - Mo) // ws + 1 == nW            # matches nn.Unfold
    # TODO(synk): when scaling C / H / W up, recheck per-step VMEM (band blocks +
    # resident weights + bias table) against v7x's 64 MiB and raise
    # vmem_limit_bytes via pltpu.CompilerParams or re-tile the band over columns.

    w1, b1, w2, b2, emb = (params["w1"], params["b1"], params["w2"],
                           params["b2"], params["emb"])
    scale = 1.0 / math.sqrt(C / nH)

    # proj1 split into Q / KV parts (PyTorch interleaves Q/K/V as out rows
    # 0/1/2 mod 3); the 1/sqrt(E) attention scale is folded into the Q columns.
    w1q = w1[0::3].T * scale                               # (C, C)
    b1q = (b1[0::3] * scale)[None, :]                      # (1, C)
    w1kv = jnp.concatenate([w1[1::3].T, w1[2::3].T], axis=1)   # (C, 2C)
    b1kv = jnp.concatenate([b1[1::3], b1[2::3]])[None, :]      # (1, 2C)
    w2t = w2.T
    b2r = b2[None, :]

    # ---- static (NumPy) index tables -------------------------------------
    # Band score-bias table: query q = m1*W + col with col = wj*ws + m2; band
    # column bc = s1*Wp + c is in-window iff c - wj*ws in [0, Mo), with bias
    # emb[m1*ws+m2, s1*Mo+(c-wj*ws)]; out-of-window columns get -1e30
    # (large finite negative, NOT -inf).
    flat_idx = np.zeros((QT, BT), np.int32)
    valid = np.zeros((QT, BT), bool)
    for m1 in range(ws):
        for col in range(W):
            wj, m2 = col // ws, col % ws
            qi = m1 * W + col
            for s1 in range(Mo):
                for s2 in range(Mo):
                    bc = s1 * Wp + wj * ws + s2
                    flat_idx[qi, bc] = (m1 * ws + m2) * (Mo * Mo) + s1 * Mo + s2
                    valid[qi, bc] = True
    bias_tbl = jnp.where(jnp.asarray(valid),
                         emb.reshape(-1)[jnp.asarray(flat_idx)],
                         jnp.float32(-1e30))               # (QT, BT)

    # Per-band validity mask of the zero-padding ring (applied to projected K/V).
    kvmask_np = np.zeros((nW, BT, 1), np.float32)
    for wi in range(nW):
        for s1 in range(Mo):
            r = wi * ws + s1
            for c in range(Wp):
                if pad <= r < pad + H and pad <= c < pad + W:
                    kvmask_np[wi, s1 * Wp + c, 0] = 1.0
    kvmask = jnp.asarray(kvmask_np)

    # ---- inputs: row-major query bands + overlapping padded K/V bands ----
    x_nhwc = jnp.transpose(x_nchw, (0, 2, 3, 1))
    x_q = x_nhwc.reshape(b * nW, QT, C)
    x_pad = jnp.pad(x_nhwc, ((0, 0), (pad, pad), (pad, pad), (0, 0)))
    row_idx = np.arange(nW)[:, None] * ws + np.arange(Mo)[None, :]   # (nW, Mo)
    x_band = x_pad[:, row_idx].reshape(b * nW, BT, C)

    kernel = functools.partial(_oca_band_kernel, C=C, nH=nH)

    flops = b * nW * (2 * QT * C * C            # Q proj
                      + 2 * BT * C * 2 * C      # K/V proj
                      + nH * 4 * QT * BT * E    # scores + PV
                      + 2 * QT * C * C)         # proj2
    transcendentals = b * nW * nH * QT * (BT + 1)
    bytes_accessed = 4 * (b * nW * (QT + BT) * C + b * H * W * C
                          + nW * BT + QT * BT + 3 * C * C + 3 * C)

    out_tok = pl.pallas_call(
        kernel,
        out_shape=jax.ShapeDtypeStruct((b, H * W, C), x_nchw.dtype),
        grid=(b, nW),
        in_specs=[
            pl.BlockSpec((1, QT, C), lambda bi, wi: (bi * nW + wi, 0, 0)),  # Q band
            pl.BlockSpec((1, BT, C), lambda bi, wi: (bi * nW + wi, 0, 0)),  # K/V band
            pl.BlockSpec((1, BT, 1), lambda bi, wi: (wi, 0, 0)),            # ring mask
            pl.BlockSpec((C, C), lambda bi, wi: (0, 0)),                    # W1_Q
            pl.BlockSpec((1, C), lambda bi, wi: (0, 0)),                    # b1_Q
            pl.BlockSpec((C, 2 * C), lambda bi, wi: (0, 0)),                # W1_KV
            pl.BlockSpec((1, 2 * C), lambda bi, wi: (0, 0)),                # b1_KV
            pl.BlockSpec((C, C), lambda bi, wi: (0, 0)),                    # W2
            pl.BlockSpec((1, C), lambda bi, wi: (0, 0)),                    # b2
            pl.BlockSpec((QT, BT), lambda bi, wi: (0, 0)),                  # bias+mask
        ],
        out_specs=pl.BlockSpec((1, QT, C), lambda bi, wi: (bi, wi, 0)),
        scratch_shapes=[pltpu.VMEM((BT, 2 * C), jnp.float32)],
        compiler_params=pltpu.CompilerParams(
            dimension_semantics=("parallel", "parallel")),
        cost_estimate=pl.CostEstimate(flops=flops,
                                      transcendentals=transcendentals,
                                      bytes_accessed=bytes_accessed),
    )(x_q, x_band, kvmask, w1q, b1q, w1kv, b1kv, w2t, b2r, bias_tbl)

    out = out_tok.reshape(b, H, W, C)
    return jnp.transpose(out, (0, 3, 1, 2))


# ---------------------------------------------------------------------------
# Pure-JAX reference (mirrors the PyTorch forward; used only for the self-check)
# ---------------------------------------------------------------------------
def overlapping_cross_attention_reference(x_nchw, params, *, num_heads,
                                          window_size, overlap_size):
    b, C, H, W = x_nchw.shape
    nH = num_heads
    E = C // nH
    ws = window_size
    Mo = int((1 + overlap_size) * ws)
    pad = int(overlap_size * ws / 2)
    nW = H // ws
    ws2, Mo2 = ws * ws, Mo * Mo
    w1, b1, w2, b2, emb = (params["w1"], params["b1"], params["w2"],
                           params["b2"], params["emb"])

    x_tok = jnp.transpose(x_nchw, (0, 2, 3, 1)).reshape(b * H * W, C)
    y = x_tok @ w1.T + b1[None, :]
    y = y.reshape(b, H, W, C, 3)
    Q, Ki, Vi = y[..., 0], y[..., 1], y[..., 2]

    Qw = Q.reshape(b, nW, ws, nW, ws, nH, E)
    Qw = jnp.transpose(Qw, (0, 5, 1, 3, 2, 4, 6)).reshape(b, nH, nW, nW, ws2, E)

    def unfold_windows(t_bhwc):
        t = jnp.transpose(t_bhwc, (0, 3, 1, 2))
        t = jnp.pad(t, ((0, 0), (0, 0), (pad, pad), (pad, pad)))
        offs = jnp.arange(nW)[:, None] * ws + jnp.arange(Mo)[None, :]
        patches = t[:, :, offs[:, None, :, None], offs[None, :, None, :]]
        patches = patches.reshape(b, nH, E, nW, nW, Mo, Mo)
        patches = jnp.transpose(patches, (0, 1, 3, 4, 5, 6, 2))
        return patches.reshape(b, nH, nW, nW, Mo2, E)

    Kw = unfold_windows(Ki)
    Vw = unfold_windows(Vi)

    G = b * nH * nW * nW
    scale = 1.0 / math.sqrt(C / nH)
    s = jnp.einsum("gqe,gke->gqk", Qw.reshape(G, ws2, E),
                   Kw.reshape(G, Mo2, E)) * scale + emb
    p = jax.nn.softmax(s, axis=-1)
    att = jnp.einsum("gqk,gke->gqe", p, Vw.reshape(G, Mo2, E))

    att = att.reshape(b, nH, nW, nW, ws, ws, E)
    att = jnp.transpose(att, (0, 2, 4, 3, 5, 1, 6)).reshape(b * H * W, C)
    out = att @ w2.T + b2[None, :]
    return jnp.transpose(out.reshape(b, H, W, C), (0, 3, 1, 2))


# ---------------------------------------------------------------------------
if __name__ == "__main__":
    batch = 2
    embed_dim = 32
    num_heads = 2
    window_size = 4
    overlap_size = 0.5
    H = W = 16

    key = jax.random.PRNGKey(0)
    k1, k2, k3, k4, k5 = jax.random.split(key, 5)
    params = {
        "w1": 0.05 * jax.random.normal(k1, (3 * embed_dim, embed_dim), jnp.float32),
        "b1": 0.05 * jax.random.normal(k2, (3 * embed_dim,), jnp.float32),
        "w2": 0.05 * jax.random.normal(k3, (embed_dim, embed_dim), jnp.float32),
        "b2": 0.05 * jax.random.normal(k4, (embed_dim,), jnp.float32),
        "emb": jnp.asarray(relative_sinusoidal_embeddings(window_size, overlap_size)),
    }
    x = jax.random.normal(k5, (batch, embed_dim, H, W), jnp.float32)

    fwd = jax.jit(functools.partial(
        overlapping_cross_attention,
        num_heads=num_heads, window_size=window_size, overlap_size=overlap_size))
    out = fwd(x, params)
    jax.block_until_ready(out)
    assert out.shape == (batch, embed_dim, H, W)

    ref = overlapping_cross_attention_reference(
        x, params, num_heads=num_heads, window_size=window_size,
        overlap_size=overlap_size)
    # tolerance accounts for the EUP approximate-reciprocal softmax normalization
    np.testing.assert_allclose(np.asarray(out), np.asarray(ref),
                               rtol=2e-3, atol=2e-3)

    print("KERNEL_OK")
</pallas_src>

<mosaic_0001>
module attributes {stable_mosaic.version = 11 : i64} {
  func.func @_oca_band_kernel(%arg0: i32, %arg1: i32, %arg2: memref<1x64x32xf32, #tpu.memory_space<vmem>>, %arg3: memref<1x108x32xf32, #tpu.memory_space<vmem>>, %arg4: memref<1x108x1xf32, #tpu.memory_space<vmem>>, %arg5: memref<32x32xf32, #tpu.memory_space<vmem>>, %arg6: memref<1x32xf32, #tpu.memory_space<vmem>>, %arg7: memref<32x64xf32, #tpu.memory_space<vmem>>, %arg8: memref<1x64xf32, #tpu.memory_space<vmem>>, %arg9: memref<32x32xf32, #tpu.memory_space<vmem>>, %arg10: memref<1x32xf32, #tpu.memory_space<vmem>>, %arg11: memref<64x108xf32, #tpu.memory_space<vmem>>, %arg12: memref<1x64x32xf32, #tpu.memory_space<vmem>>, %arg13: memref<108x64xf32, #tpu.memory_space<vmem>>) attributes {dimension_semantics = [#tpu.dimension_semantics<parallel>, #tpu.dimension_semantics<parallel>], iteration_bounds = array<i64: 2, 4>, scalar_prefetch = 0 : i64, scratch_operands = 1 : i64, tpu.core_type = #tpu.core_type<tc>, window_params = [{transform_indices = @transform_0, window_bounds = array<i64: 1, 64, 32>}, {transform_indices = @transform_1, window_bounds = array<i64: 1, 108, 32>}, {transform_indices = @transform_2, window_bounds = array<i64: 1, 108, 1>}, {pipeline_mode = #tpu.pipeline_mode<synchronous>, transform_indices = @transform_3, window_bounds = array<i64: 32, 32>}, {pipeline_mode = #tpu.pipeline_mode<synchronous>, transform_indices = @transform_4, window_bounds = array<i64: 1, 32>}, {pipeline_mode = #tpu.pipeline_mode<synchronous>, transform_indices = @transform_5, window_bounds = array<i64: 32, 64>}, {pipeline_mode = #tpu.pipeline_mode<synchronous>, transform_indices = @transform_6, window_bounds = array<i64: 1, 64>}, {pipeline_mode = #tpu.pipeline_mode<synchronous>, transform_indices = @transform_7, window_bounds = array<i64: 32, 32>}, {pipeline_mode = #tpu.pipeline_mode<synchronous>, transform_indices = @transform_8, window_bounds = array<i64: 1, 32>}, {pipeline_mode = #tpu.pipeline_mode<synchronous>, transform_indices = @transform_9, window_bounds = array<i64: 64, 108>}, {transform_indices = @transform_10, window_bounds = array<i64: 1, 64, 32>}]} {
    %c0 = arith.constant 0 : index
    %c0_0 = arith.constant 0 : index
    %c0_1 = arith.constant 0 : index
    %0 = vector.load %arg2[%c0, %c0_0, %c0_1] : memref<1x64x32xf32, #tpu.memory_space<vmem>>, vector<1x64x32xf32>
    %1 = vector.shape_cast %0 : vector<1x64x32xf32> to vector<64x32xf32>
    %c0_2 = arith.constant 0 : index
    %c0_3 = arith.constant 0 : index
    %2 = vector.load %arg5[%c0_2, %c0_3] : memref<32x32xf32, #tpu.memory_space<vmem>>, vector<32x32xf32>
    %cst = arith.constant dense<0.000000e+00> : vector<64x32xf32>
    %3 = tpu.matmul %1, %2, %cst {dimension_numbers = #tpu.dot_dimension_numbers<[1], [0], [0], [1], [0, 0, 1, 1], [], []>} : vector<64x32xf32>, vector<32x32xf32>, vector<64x32xf32> -> vector<64x32xf32>
    %c0_4 = arith.constant 0 : index
    %c0_5 = arith.constant 0 : index
    %4 = vector.load %arg6[%c0_4, %c0_5] : memref<1x32xf32, #tpu.memory_space<vmem>>, vector<1x32xf32>
    %5 = vector.broadcast %4 : vector<1x32xf32> to vector<64x32xf32>
    %6 = arith.addf %3, %5 : vector<64x32xf32>
    %c0_6 = arith.constant 0 : index
    %c0_7 = arith.constant 0 : index
    %c0_8 = arith.constant 0 : index
    %7 = vector.load %arg3[%c0_6, %c0_7, %c0_8] : memref<1x108x32xf32, #tpu.memory_space<vmem>>, vector<1x108x32xf32>
    %8 = vector.shape_cast %7 : vector<1x108x32xf32> to vector<108x32xf32>
    %c0_9 = arith.constant 0 : index
    %c0_10 = arith.constant 0 : index
    %9 = vector.load %arg7[%c0_9, %c0_10] : memref<32x64xf32, #tpu.memory_space<vmem>>, vector<32x64xf32>
    %cst_11 = arith.constant dense<0.000000e+00> : vector<108x64xf32>
    %10 = tpu.matmul %8, %9, %cst_11 {dimension_numbers = #tpu.dot_dimension_numbers<[1], [0], [0], [1], [0, 0, 1, 1], [], []>} : vector<108x32xf32>, vector<32x64xf32>, vector<108x64xf32> -> vector<108x64xf32>
    %c0_12 = arith.constant 0 : index
    %c0_13 = arith.constant 0 : index
    %11 = vector.load %arg8[%c0_12, %c0_13] : memref<1x64xf32, #tpu.memory_space<vmem>>, vector<1x64xf32>
    %12 = vector.broadcast %11 : vector<1x64xf32> to vector<108x64xf32>
    %13 = arith.addf %10, %12 : vector<108x64xf32>
    %c0_14 = arith.constant 0 : index
    %c0_15 = arith.constant 0 : index
    %c0_16 = arith.constant 0 : index
    %14 = vector.load %arg4[%c0_14, %c0_15, %c0_16] : memref<1x108x1xf32, #tpu.memory_space<vmem>>, vector<1x108x1xf32>
    %15 = vector.shape_cast %14 : vector<1x108x1xf32> to vector<108x1xf32>
    %16 = vector.broadcast %15 : vector<108x1xf32> to vector<108x64xf32>
    %17 = arith.mulf %13, %16 : vector<108x64xf32>
    %c0_17 = arith.constant 0 : index
    %c0_18 = arith.constant 0 : index
    %18 = vector.load %arg13[%c0_17, %c0_18] : memref<108x64xf32, #tpu.memory_space<vmem>>, vector<108x64xf32>
    tpu.vector_store %arg13[%c0_17, %c0_18], %17 {strides = array<i32>} : memref<108x64xf32, #tpu.memory_space<vmem>>, vector<108x64xf32>,
    %c0_19 = arith.constant 0 : index
    %c0_20 = arith.constant 0 : index
    %19 = vector.load %arg11[%c0_19, %c0_20] : memref<64x108xf32, #tpu.memory_space<vmem>>, vector<64x108xf32>
    %20 = vector.extract_strided_slice %6 {offsets = [0, 0], sizes = [64, 16], strides = [1, 1]} : vector<64x32xf32> to vector<64x16xf32>
    %c0_21 = arith.constant 0 : index
    %c0_22 = arith.constant 0 : index
    %21 = vector.load %arg13[%c0_21, %c0_22] : memref<108x64xf32, #tpu.memory_space<vmem>>, vector<108x16xf32>
    %c0_23 = arith.constant 0 : index
    %c32 = arith.constant 32 : index
    %22 = vector.load %arg13[%c0_23, %c32] : memref<108x64xf32, #tpu.memory_space<vmem>>, vector<108x16xf32>
    %cst_24 = arith.constant dense<0.000000e+00> : vector<64x108xf32>
    %23 = tpu.matmul %20, %21, %cst_24 {dimension_numbers = #tpu.dot_dimension_numbers<[1], [1], [0], [0], [0, 0, 1, 0], [], []>} : vector<64x16xf32>, vector<108x16xf32>, vector<64x108xf32> -> vector<64x108xf32>
    %24 = arith.addf %23, %19 : vector<64x108xf32>
    %cst_25 = arith.constant dense<0xFF800000> : vector<64xf32>
    %25 = vector.multi_reduction <maximumf>, %24, %cst_25 [1] : vector<64x108xf32> to vector<64xf32>
    %26 = vector.shape_cast %25 : vector<64xf32> to vector<64x1xf32>
    %27 = vector.broadcast %26 : vector<64x1xf32> to vector<64x108xf32>
    %28 = arith.subf %24, %27 : vector<64x108xf32>
    %29 = math.exp %28 : vector<64x108xf32>
    %cst_26 = arith.constant dense<0.000000e+00> : vector<64xf32>
    %30 = vector.multi_reduction <add>, %29, %cst_26 [1] : vector<64x108xf32> to vector<64xf32>
    %31 = vector.shape_cast %30 : vector<64xf32> to vector<64x1xf32>
    %32 = tpu.reciprocal %31 {approx = true} : vector<64x1xf32> -> vector<64x1xf32>
    %33 = vector.broadcast %32 : vector<64x1xf32> to vector<64x108xf32>
    %34 = arith.mulf %29, %33 : vector<64x108xf32>
    %cst_27 = arith.constant dense<0.000000e+00> : vector<64x16xf32>
    %35 = tpu.matmul %34, %22, %cst_27 {dimension_numbers = #tpu.dot_dimension_numbers<[1], [0], [0], [1], [0, 0, 1, 1], [], []>} : vector<64x108xf32>, vector<108x16xf32>, vector<64x16xf32> -> vector<64x16xf32>
    %36 = vector.extract_strided_slice %6 {offsets = [0, 16], sizes = [64, 16], strides = [1, 1]} : vector<64x32xf32> to vector<64x16xf32>
    %c0_28 = arith.constant 0 : index
    %c16 = arith.constant 16 : index
    %37 = vector.load %arg13[%c0_28, %c16] : memref<108x64xf32, #tpu.memory_space<vmem>>, vector<108x16xf32>
    %c0_29 = arith.constant 0 : index
    %c48 = arith.constant 48 : index
    %38 = vector.load %arg13[%c0_29, %c48] : memref<108x64xf32, #tpu.memory_space<vmem>>, vector<108x16xf32>
    %cst_30 = arith.constant dense<0.000000e+00> : vector<64x108xf32>
    %39 = tpu.matmul %36, %37, %cst_30 {dimension_numbers = #tpu.dot_dimension_numbers<[1], [1], [0], [0], [0, 0, 1, 0], [], []>} : vector<64x16xf32>, vector<108x16xf32>, vector<64x108xf32> -> vector<64x108xf32>
    %40 = arith.addf %39, %19 : vector<64x108xf32>
    %cst_31 = arith.constant dense<0xFF800000> : vector<64xf32>
    %41 = vector.multi_reduction <maximumf>, %40, %cst_31 [1] : vector<64x108xf32> to vector<64xf32>
    %42 = vector.shape_cast %41 : vector<64xf32> to vector<64x1xf32>
    %43 = vector.broadcast %42 : vector<64x1xf32> to vector<64x108xf32>
    %44 = arith.subf %40, %43 : vector<64x108xf32>
    %45 = math.exp %44 : vector<64x108xf32>
    %cst_32 = arith.constant dense<0.000000e+00> : vector<64xf32>
    %46 = vector.multi_reduction <add>, %45, %cst_32 [1] : vector<64x108xf32> to vector<64xf32>
    %47 = vector.shape_cast %46 : vector<64xf32> to vector<64x1xf32>
    %48 = tpu.reciprocal %47 {approx = true} : vector<64x1xf32> -> vector<64x1xf32>
    %49 = vector.broadcast %48 : vector<64x1xf32> to vector<64x108xf32>
    %50 = arith.mulf %45, %49 : vector<64x108xf32>
    %cst_33 = arith.constant dense<0.000000e+00> : vector<64x16xf32>
    %51 = tpu.matmul %50, %38, %cst_33 {dimension_numbers = #tpu.dot_dimension_numbers<[1], [0], [0], [1], [0, 0, 1, 1], [], []>} : vector<64x108xf32>, vector<108x16xf32>, vector<64x16xf32> -> vector<64x16xf32>
    %52 = tpu.concatenate %35, %51 in 1 : vector<64x16xf32>, vector<64x16xf32> -> vector<64x32xf32>
    %c0_34 = arith.constant 0 : index
    %c0_35 = arith.constant 0 : index
    %53 = vector.load %arg9[%c0_34, %c0_35] : memref<32x32xf32, #tpu.memory_space<vmem>>, vector<32x32xf32>
    %cst_36 = arith.constant dense<0.000000e+00> : vector<64x32xf32>
    %54 = tpu.matmul %52, %53, %cst_36 {dimension_numbers = #tpu.dot_dimension_numbers<[1], [0], [0], [1], [0, 0, 1, 1], [], []>} : vector<64x32xf32>, vector<32x32xf32>, vector<64x32xf32> -> vector<64x32xf32>
    %c0_37 = arith.constant 0 : index
    %c0_38 = arith.constant 0 : index
    %55 = vector.load %arg10[%c0_37, %c0_38] : memref<1x32xf32, #tpu.memory_space<vmem>>, vector<1x32xf32>
    %56 = vector.broadcast %55 : vector<1x32xf32> to vector<64x32xf32>
    %57 = arith.addf %54, %56 : vector<64x32xf32>
    %c0_39 = arith.constant 0 : index
    %c0_40 = arith.constant 0 : index
    %c0_41 = arith.constant 0 : index
    %58 = vector.load %arg12[%c0_39, %c0_40, %c0_41] : memref<1x64x32xf32, #tpu.memory_space<vmem>>, vector<1x64x32xf32>
    %59 = vector.shape_cast %58 : vector<1x64x32xf32> to vector<64x32xf32>
    %60 = vector.shape_cast %57 : vector<64x32xf32> to vector<1x64x32xf32>
    tpu.vector_store %arg12[%c0_39, %c0_40, %c0_41], %60 {strides = array<i32>} : memref<1x64x32xf32, #tpu.memory_space<vmem>>, vector<1x64x32xf32>,
    return
  }
  func.func @transform_0(%arg0: i32, %arg1: i32) -> (i32, i32, i32) {
    %c4_i32 = arith.constant 4 : i32
    %0 = arith.muli %arg0, %c4_i32 : i32
    %1 = arith.addi %0, %arg1 : i32
    %c0_i32 = arith.constant 0 : i32
    %c0_i32_0 = arith.constant 0 : i32
    %c0_i32_1 = arith.constant 0 : i32
    return %1, %c0_i32, %c0_i32_0 : i32, i32, i32
  }
  func.func @transform_1(%arg0: i32, %arg1: i32) -> (i32, i32, i32) {
    %c4_i32 = arith.constant 4 : i32
    %0 = arith.muli %arg0, %c4_i32 : i32
    %1 = arith.addi %0, %arg1 : i32
    %c0_i32 = arith.constant 0 : i32
    %c0_i32_0 = arith.constant 0 : i32
    %c0_i32_1 = arith.constant 0 : i32
    return %1, %c0_i32, %c0_i32_0 : i32, i32, i32
  }
  func.func @transform_2(%arg0: i32, %arg1: i32) -> (i32, i32, i32) {
    %c0_i32 = arith.constant 0 : i32
    %c0_i32_0 = arith.constant 0 : i32
    %c0_i32_1 = arith.constant 0 : i32
    return %arg1, %c0_i32, %c0_i32_0 : i32, i32, i32
  }
  func.func @transform_3(%arg0: i32, %arg1: i32) -> (i32, i32) {
    %c0_i32 = arith.constant 0 : i32
    %c0_i32_0 = arith.constant 0 : i32
    %c0_i32_1 = arith.constant 0 : i32
    return %c0_i32, %c0_i32_0 : i32, i32
  }
  func.func @transform_4(%arg0: i32, %arg1: i32) -> (i32, i32) {
    %c0_i32 = arith.constant 0 : i32
    %c0_i32_0 = arith.constant 0 : i32
    %c0_i32_1 = arith.constant 0 : i32
    return %c0_i32, %c0_i32_0 : i32, i32
  }
  func.func @transform_5(%arg0: i32, %arg1: i32) -> (i32, i32) {
    %c0_i32 = arith.constant 0 : i32
    %c0_i32_0 = arith.constant 0 : i32
    %c0_i32_1 = arith.constant 0 : i32
    return %c0_i32, %c0_i32_0 : i32, i32
  }
  func.func @transform_6(%arg0: i32, %arg1: i32) -> (i32, i32) {
    %c0_i32 = arith.constant 0 : i32
    %c0_i32_0 = arith.constant 0 : i32
    %c0_i32_1 = arith.constant 0 : i32
    return %c0_i32, %c0_i32_0 : i32, i32
  }
  func.func @transform_7(%arg0: i32, %arg1: i32) -> (i32, i32) {
    %c0_i32 = arith.constant 0 : i32
    %c0_i32_0 = arith.constant 0 : i32
    %c0_i32_1 = arith.constant 0 : i32
    return %c0_i32, %c0_i32_0 : i32, i32
  }
  func.func @transform_8(%arg0: i32, %arg1: i32) -> (i32, i32) {
    %c0_i32 = arith.constant 0 : i32
    %c0_i32_0 = arith.constant 0 : i32
    %c0_i32_1 = arith.constant 0 : i32
    return %c0_i32, %c0_i32_0 : i32, i32
  }
  func.func @transform_9(%arg0: i32, %arg1: i32) -> (i32, i32) {
    %c0_i32 = arith.constant 0 : i32
    %c0_i32_0 = arith.constant 0 : i32
    %c0_i32_1 = arith.constant 0 : i32
    return %c0_i32, %c0_i32_0 : i32, i32
  }
  func.func @transform_10(%arg0: i32, %arg1: i32) -> (i32, i32, i32) {
    %c0_i32 = arith.constant 0 : i32
    %c0_i32_0 = arith.constant 0 : i32
    return %arg0, %arg1, %c0_i32 : i32, i32, i32
  }
}

</mosaic_0001>

<bundles_post_ra>
// kernel: overlapping_cross_attention.1
= control target key start
LH: loop header
LB: loop body
LE: loop exit
PB: predicated region body
PF: predicated region fallthrough
CT: control target
= control target key end

     0   :  { %s3908_s0 = inlined_call_operand.vmem [shape: f32[8,64,32], index: 0, kind: input, shape index: {}]   ;;  %s3909_s1 = inlined_call_operand.vmem [shape: f32[8,108,32], index: 1, kind: input, shape index: {}]   ;;  %s3910_s2 = inlined_call_operand.vmem [shape: f32[4,108,1], index: 2, kind: input, shape index: {}]   ;;  %s3911_s3 = inlined_call_operand.vmem [shape: f32[32,32], index: 3, kind: input, shape index: {}]   ;;  %s3912_s4 = inlined_call_operand.vmem [shape: f32[1,32], index: 4, kind: input, shape index: {}]   ;;  %s3913_s5 = inlined_call_operand.vmem [shape: f32[32,64], index: 5, kind: input, shape index: {}]   ;;  %s3914_s6 = inlined_call_operand.vmem [shape: f32[1,64], index: 6, kind: input, shape index: {}]   ;;  %s3915_s7 = inlined_call_operand.vmem [shape: f32[32,32], index: 7, kind: input, shape index: {}]   ;;  %s3916_s8 = inlined_call_operand.vmem [shape: f32[1,32], index: 8, kind: input, shape index: {}]   ;;  %s3917_s9 = inlined_call_operand.vmem [shape: f32[64,108], index: 9, kind: input, shape index: {}]   ;;  %s3918_s10 = inlined_call_operand.hbm [shape: f32[2,256,32], index: 10, kind: output, shape index: {}]  }
   0x1   :  { %3923 = sst [smem:[#allocation10_spill]] %s3911_s3 }
   0x2   :  { %3924 = sst [smem:[#allocation11_spill]] %s3913_s5 }
   0x3   :  { %15 = vsyncpa [#allocation4], 0 }
   0x4   :  { %17 = vsyncpa [#allocation4 + $0x1], 0  ;;  %s3180_s13 = smov 0   ;;  %s3182_s14 = smov 0  }
   0x5   :  { %s3184_s15 = smov 0   ;;  %s3186_s16 = smov 0  }
   0x6   :  { %s3188_s17 = smov 0   ;;  %s3190_s18 = smov 0  }
   0x7   :  { %s3192_s19 = smov 0   ;;  %s3194_s20 = smov 0  }
   0x8 LB: > { %3925 = sst [smem:[#allocation6_spill]] %s3106_s18  ;;  %s2119_s21 = sadd.s32 4294967295, %s3114_s20   ;;  %s3114_s20 = sphi %s3194_s20, %s23_s20   ;;  %s3110_s19 = sphi %s3192_s19, %s3940_s19   ;;  %s3106_s18 = sphi %s3190_s18, %s3939_s18   ;;  %s3102_s17 = sphi %s3188_s17, %s3938_s17   ;;  %s3098_s16 = sphi %s3186_s16, %s3937_s16   ;;  %s3094_s15 = sphi %s3184_s15, %s3943_s15   ;;  %s3090_s14 = sphi %s3182_s14, %s3942_s14   ;;  %s3086_s13 = sphi %s3180_s13, %s3941_s13  }
   0x9   : > { %3926 = sst [smem:[#allocation7_spill]] %s3110_s19  ;;  %s2120_s22 = sadd.s32 4294967294, %s3114_s20  }
   0xa   : > { %s32_s23 = sadd.s32 1, %s3106_s18  ;;  %s35_s24 = sadd.s32 1, %s3110_s19 }
   0xb   : > { %p33_p0 = scmp.ge.s32.totalorder %s32_s23, 4  ;;  %p287_p1 = scmp.ne.s32.totalorder %s3094_s15, %s3090_s14 }
   0xc   : > { %p288_p2 = scmp.eq.s32.totalorder %s2119_s21, 7  ;;  %p293_p5 = scmp.ne.s32.totalorder %s3090_s14, %s3086_s13 }
   0xd   : > { %s3945_s23 = smov (%p33_p0, %s32_s23), 0  ;;  %s3947_s24 = smov (!%p33_p0, %s35_s24), %s3110_s19 }
   0xe   : > { %3927 = sst [smem:[#allocation8_spill]] %s3945_s23  ;;  %s273_s25 = ssub.s32 %s3106_s18, %s3945_s23 }
   0xf   : > { %p3231_p3 = por %p288_p2, %p287_p1  ;;  %p37_p4 = scmp.ge.s32.totalorder %s3947_s24, 2 }
  0x10   : > { %p294_p6 = scmp.eq.s32.totalorder %s2120_s22, 7  ;;  %p2127_p7 = scmp.ge.s32.totalorder %s3114_s20, 1 }
  0x11   : > { %s3949_s24 = smov (%p37_p4, %s3947_s24), 0  ;;  %p365_p9 = scmp.lt.s32.totalorder %s3114_s20, 9 }
  0x12   : > { %3929 = sst [smem:[#allocation9_spill]] %s3949_s24  ;;  %p3240_p8 = por %p294_p6, %p293_p5 }
  0x13   : > { %s272_s28 = ssub.s32 %s3110_s19, %s3949_s24  ;;  %s277_s29 = sadd.s32 1, %s3094_s15 }
  0x14   : > { %s274_s30 = sor.u32 %s273_s25, %s272_s28  ;;  %p366_p10 = pnand %p2127_p7, %p365_p9 }
  0x15   : > { %p275_p11 = scmp.eq.s32.totalorder %s274_s30, 0  ;;  %s3931_s5 = sld [smem:[#allocation11_spill]] (!%p366_p10)  ;;  %v3116_v5 = vmov (!%p366_p10), 0   ;;  %vm460_vm0 = vcmask (!%p366_p10), 261120   ;;  %v3355_v53 = vld [vmem:[%s3914_s6] ss:$0 sm:$0xff] (!%p366_p10) }
  0x16   : > { %369 = sbr.rel (%p366_p10) target bundleno = 2122 (0x84a), region = 60  ;;  %s2129_s25 = sshll.u32 (!%p366_p10), %s3102_s17, 2  ;;  %2849 = vset.pattern.permute.xlu0 (!%p366_p10), %v3116_v5  ;;  %2850 = vset.pattern.permute.xlu1 (!%p366_p10), %v3116_v5  ;;  %v3361_v57 = vld [vmem:[%s3912_s4] ss:$0 sm:$0xff] (!%p366_p10)  ;;  %vm890_vm1 = vcmask (!%p366_p10), 523264   ;;  %vm928_vm2 = vcmask (!%p366_p10), 130048  }
  0x17   : > { %s3249_s11 = scalar_select %p275_p11, %s3094_s15, %s277_s29  }
  0x18   : > { %s418_s30 = sadd.s32 (!%p366_p10), %s3098_s16, %s2129_s25  ;;  %s3932_s3 = sld [smem:[#allocation10_spill]] (!%p366_p10)  ;;  %vm3390_vm3 = vmpackc.low (!%p366_p10), %vm928_vm2, %vm928_vm2  ;;  %vm904_vm4 = vcmask (!%p366_p10), 519168   ;;  %vm1100_vm5 = vcmask (!%p366_p10), 883712   ;;  %vm1254_vm6 = vcmask (!%p366_p10), 1043456   ;;  %vm3119_vm7 = vmmov (!%p366_p10), 1  }
  0x19   : > { %p435_p12 = scmp.lt.s32.totalorder (!%p366_p10), %s3098_s16, 3  ;;  %p419_p13 = scmp.lt.s32.totalorder (!%p366_p10), %s418_s30, 7  ;;  %vm3569_vm8 = vmpackc.low (!%p366_p10), %vm1254_vm6, %vm3119_vm7 }
  0x1a   : > { %s3120_s25 = smov (!%p366_p10), 80   ;;  %s2231_s28 = sshll.u32 (!%p366_p10), %s3098_s16, 3 }
  0x1b   : > { %v604_v0 = vld [vmem:[%s3931_s5] sm:$0xff] (!%p366_p10)  ;;  %v605_v1 = vld [vmem:[%s3931_s5 + $0x8] sm:$0xff] (!%p366_p10)  ;;  %v606_v2 = vld [vmem:[%s3931_s5 + $0x10] sm:$0xff] (!%p366_p10) }
  0x1c   : > { %v2604_v3 = vpack.c.bf16 (!%p366_p10), %v605_v1, %v604_v0  ;;  %v607_v4 = vld [vmem:[%s3931_s5 + $0x18] sm:$0xff] (!%p366_p10) }
  0x1d   : > { %v2608_v8 = vpack.c.bf16 %v607_v4, %v606_v2  ;;  %s436_s29 = scalar_select %p435_p12, %s3098_s16, 3 }
  0x1e   : > { %v449_v6 = vld [vmem:[%s3932_s3] sm:$0xff]  ;;  %v450_v7 = vld [vmem:[%s3932_s3 + $0x8] sm:$0xff]  ;;  %v451_v10 = vld [vmem:[%s3932_s3 + $0x10] sm:$0xff]  ;;  %2605 = vmatprep.subr.bf16.mxu1 %v2604_v3  ;;  %s3951_s30 = smov (!%p419_p13, %s418_s30), 7 }
  0x1f   : > { %v2596_v9 = vpack.c.bf16 %v450_v7, %v449_v6  ;;  %v452_v11 = vld [vmem:[%s3932_s3 + $0x18] sm:$0xff]  ;;  %2607 = vmatpush3.bf16.msra.mxu1 %v2604_v3  ;;  %s2769_s12 = smul.u32 112, %s436_s29  ;;  %s2236_s23 = sshll.u32 %s3951_s30, 6 }
  0x20   : > { %v2600_v12 = vpack.c.bf16 %v452_v11, %v451_v10  ;;  %2609 = vmatprep.subr.bf16.mxu1 %v2608_v8  ;;  %s2768_s21 = smul.u32 112, %s3951_s30  ;;  %s3287_s3 = scalar_lea.vmem %s3908_s0, %s2236_s23 }
  0x21   : > { %2597 = vmatprep.subr.bf16.mxu0 %v2596_v9  ;;  %s3282_s24 = scalar_lea.vmem %s3910_s2, %s2769_s12  ;;  %v441_v14 = vld [vmem:[%s3287_s3] sm:$0xff]  ;;  %v442_v21 = vld [vmem:[%s3287_s3 + $0x8] sm:$0xff]  ;;  %v443_v28 = vld [vmem:[%s3287_s3 + $0x10] sm:$0xff]  ;;  %s3117_s12 = smov 96  }
  0x22   : > { %2599 = vmatpush3.bf16.msra.mxu0 %v2596_v9  ;;  %s3292_s19 = scalar_lea.vmem %s3909_s1, %s2768_s21  ;;  %v792_v13 = vld [vmem:[%s3282_s24] sm:$0xff]  ;;  %v793_v18 = vld [vmem:[%s3282_s24 + $0x8] sm:$0xff]  ;;  %2375 = vmatprep.mubr.msk.f32.mxu0 %vm460_vm0, %v441_v14  ;;  %v794_v22 = vld [vmem:[%s3282_s24 + $0x10] sm:$0xff]  ;;  %s3121_s21 = smov 16  }
  0x23   : > { %2601 = vmatprep.subr.bf16.mxu0 %v2600_v12  ;;  %2611 = vmatpush3.bf16.msra.mxu1 %v2608_v8  ;;  %v590_v15 = vld [vmem:[%s3292_s19] sm:$0xff]  ;;  %v591_v16 = vld [vmem:[%s3292_s19 + $0x8] sm:$0xff]  ;;  %v592_v17 = vld [vmem:[%s3292_s19 + $0x10] sm:$0xff]  ;;  %s414_s23 = sand.u32 1, %s3090_s14   ;;  %s2232_s29 = sshll.u32 %s3102_s17, 5 }
  0x24   : > { %808 = vperm.xlu0 %2849, %v792_v13   ;;  %2395 = vmatprep.mubr.msk.f32.mxu1 %vm460_vm0, %v590_v15  ;;  %v593_v19 = vld [vmem:[%s3292_s19 + $0x18] sm:$0xff]  ;;  %v594_v20 = vld [vmem:[%s3292_s19 + $0x20] sm:$0xff]  ;;  %v595_v24 = vld [vmem:[%s3292_s19 + $0x28] sm:$0xff]  ;;  %s2128_s22 = sshll.u32 %s414_s23, 6 }
  0x25   : > { %v796_v23 = vld [vmem:[%s3282_s24 + $0x20] sm:$0xff]  ;;  %818 = vperm.xlu1 %2850, %v794_v22   ;;  %v795_v25 = vld [vmem:[%s3282_s24 + $0x18] sm:$0xff]  ;;  %v596_v26 = vld [vmem:[%s3292_s19 + $0x30] sm:$0xff] }
  0x26   : > { %2603 = vmatpush3.bf16.msra.mxu0 %v2600_v12  ;;  %2396 = vmatmul.mubr.msk.f32.vlgmr.msra.gmra.mrb[0].mxu1 %vm460_vm0, %v591_v16  ;;  %v798_v27 = vld [vmem:[%s3282_s24 + $0x30] sm:$0xff]  ;;  %v444_v29 = vld [vmem:[%s3287_s3 + $0x18] sm:$0xff]  ;;  %v445_v30 = vld [vmem:[%s3287_s3 + $0x20] sm:$0xff] }
  0x27   : > { %2398 = vmatprep.mubr.msk.f32.mxu1 %vm460_vm0, %v592_v17  ;;  %v597_v31 = vld [vmem:[%s3292_s19 + $0x38] sm:$0xff]  ;;  %v797_v32 = vld [vmem:[%s3282_s24 + $0x28] sm:$0xff]  ;;  %v598_v33 = vld [vmem:[%s3292_s19 + $0x40] sm:$0xff] }
  0x28   : > { %813 = vperm.xlu0 %2849, %v793_v18   ;;  %v800_v34 = vld [vmem:[%s3282_s24 + $0x40] sm:$0xff]  ;;  %v446_v35 = vld [vmem:[%s3287_s3 + $0x28] sm:$0xff]  ;;  %v447_v36 = vld [vmem:[%s3287_s3 + $0x30] sm:$0xff] }
  0x29   : > { %2376 = vmatmul.mubr.msk.f32.vlgmr.msra.gmra.mrb[0].mxu0 %vm460_vm0, %v442_v21  ;;  %823 = vperm.xlu1 %2850, %v795_v25   ;;  %v599_v37 = vld [vmem:[%s3292_s19 + $0x48] sm:$0xff]  ;;  %v799_v38 = vld [vmem:[%s3282_s24 + $0x38] sm:$0xff]  ;;  %v600_v39 = vld [vmem:[%s3292_s19 + $0x50] sm:$0xff] }
  0x2a   : > { %2399 = vmatmul.mubr.msk.f32.gmra.mrb[2].mxu1 %vm460_vm0, %v593_v19  ;;  %2378 = vmatprep.mubr.msk.f32.mxu0 %vm460_vm0, %v443_v28  ;;  %v802_v40 = vld [vmem:[%s3282_s24 + $0x50] sm:$0xff]  ;;  %v448_v41 = vld [vmem:[%s3287_s3 + $0x38] sm:$0xff]  ;;  %v801_v43 = vld [vmem:[%s3282_s24 + $0x48] sm:$0xff]  ;;  %s2016_s3 = sadd.s32 %s2232_s29, %s2231_s28 }
  0x2b   : > { %2401 = vmatprep.mubr.msk.f32.mxu1 %vm460_vm0, %v594_v20  ;;  %v601_v42 = vld [vmem:[%s3292_s19 + $0x58] sm:$0xff]  ;;  %v602_v44 = vld [vmem:[%s3292_s19 + $0x60] sm:$0xff]  ;;  %v603_v46 = vld [vmem:[%s3292_s19 + $0x68] sm:$0xf]  ;;  %s2233_s5 = sshll.u32 %s2016_s3, 7 }
  0x2c   : > { %828 = vperm.xlu0 %2849, %v796_v23   ;;  %v804_v45 = vld [vmem:[%s3282_s24 + $0x60] sm:$0xff]  ;;  %v803_v47 = vld [vmem:[%s3282_s24 + $0x58] sm:$0xff]  ;;  %v805_v48 = vld [vmem:[%s3282_s24 + $0x68] sm:$0xf]  ;;  %s3118_s24 = smov 112   ;;  %s3848_s30 = scalar_lea.hbm %s3918_s10, %s2233_s5 }
  0x2d   : > { %2379 = vmatmul.mubr.msk.f32.gmra.mrb[2].mxu0 %vm460_vm0, %v444_v29  ;;  %833 = vperm.xlu1 %2850, %v797_v32  }
  0x2e   : > { %2402 = vmatmul.mubr.msk.f32.gmra.mrb[4].mxu1 %vm460_vm0, %v595_v24  ;;  %2381 = vmatprep.mubr.msk.f32.mxu0 %vm460_vm0, %v445_v30 }
  0x2f   : > { %2404 = vmatprep.mubr.msk.f32.mxu1 %vm460_vm0, %v596_v26 }
  0x30   : > { %838 = vperm.xlu0 %2849, %v798_v27  }
  0x31   : > { %2382 = vmatmul.mubr.msk.f32.gmra.mrb[4].mxu0 %vm460_vm0, %v446_v35  ;;  %843 = vperm.xlu1 %2850, %v799_v38  }
  0x32   : > { %2405 = vmatmul.mubr.msk.f32.gmra.mrb[6].mxu1 %vm460_vm0, %v597_v31  ;;  %2384 = vmatprep.mubr.msk.f32.mxu0 %vm460_vm0, %v447_v36 }
  0x33   : > { %2407 = vmatprep.mubr.msk.f32.mxu1 %vm460_vm0, %v598_v33 }
  0x34   : > { %848 = vperm.xlu0 %2849, %v800_v34  }
  0x35   : > { %2385 = vmatmul.mubr.msk.f32.gmra.mrb[6].mxu0 %vm460_vm0, %v448_v41  ;;  %853 = vperm.xlu1 %2850, %v801_v43  }
  0x36   : > { %2408 = vmatmul.mubr.msk.f32.gmra.mrb[8].mxu1 %vm460_vm0, %v599_v37 }
  0x37   : > { %2410 = vmatprep.mubr.msk.f32.mxu1 %vm460_vm0, %v600_v39 }
  0x38   : > { %858 = vperm.xlu0 %2849, %v802_v40  }
  0x39   : > { %863 = vperm.xlu1 %2850, %v803_v47  }
  0x3a   : > { %2411 = vmatmul.mubr.msk.f32.gmra.mrb[10].mxu1 %vm460_vm0, %v601_v42 }
  0x3b   : > { %2413 = vmatprep.mubr.msk.f32.mxu1 %vm460_vm0, %v602_v44 }
  0x3c   : > { %868 = vperm.xlu0 %2849, %v804_v45  }
  0x3d   : > { %873 = vperm.xlu1 %2850, %v805_v48  }
  0x3e   : > { %2414 = vmatmul.mubr.msk.f32.gmra.mrb[12].mxu1 %vm460_vm0, %v603_v46 }
  0xa3   : > { %v809_v50 = vpop.permute.xlu0 %808 }
  0xa4   : > { %v819_v49 = vpop.permute.xlu1 %818 }
  0xa7   : > { %v814_v52 = vpop.permute.xlu0 %813 }
  0xa8   : > { %v824_v51 = vpop.permute.xlu1 %823 }
  0xab   : > { %v829_v60 = vpop.permute.xlu0 %828 }
  0xac   : > { %v834_v58 = vpop.permute.xlu1 %833 }
  0xaf   : > { %v839_v11 = vpop.permute.xlu0 %838 }
  0xb0   : > { %v844_v8 = vpop.permute.xlu1 %843 }
  0xb3   : > { %v849_v32 = vpop.permute.xlu0 %848 }
  0xb4   : > { %v854_v27 = vpop.permute.xlu1 %853 }
  0xf9   : > { %v2397_v54 = vpop.f32.mrb[0].mxu1 }
  0xfa   : > { %v729_v55 = vadd.f32 %v2397_v54, %v3355_v53  ;;  %v723_v56 = vpop.f32.mrb[1].mxu1 }
  0xfb   : > { %v724_v59 = vadd.f32 %v3355_v53, %v723_v56  ;;  %v859_v56 = vpop.permute.xlu0 %858 }
  0xfc   : > { %v877_v61 = vmul.f32 %v814_v52, %v729_v55  ;;  %v2377_v62 = vpop.f32.mrb[0].mxu0 }
  0xfd   : > { %v876_v63 = vmul.f32 %v809_v50, %v724_v59  ;;  %v2400_v0 = vpop.f32.mrb[2].mxu1  ;;  %v3365_v1 = vadd.f32 %v2377_v62, %v3361_v57  ;;  %v551_v2 = vpop.f32.mrb[1].mxu0 }
  0xfe   : > { %892 = vst.msk [vmem:[#allocation2 + $0x8] sm:$0xff] %vm890_vm1, %v877_v61  ;;  %v739_v3 = vadd.f32 %v2400_v0, %v3355_v53  ;;  %v733_v4 = vpop.f32.mrb[3].mxu1  ;;  %v3370_v5 = vadd.f32 %v3361_v57, %v551_v2  ;;  %v864_v50 = vpop.permute.xlu1 %863 }
  0xff   : > { %891 = vst.msk [vmem:[#allocation2] sm:$0xff] %vm890_vm1, %v876_v63  ;;  %v734_v6 = vadd.f32 %v3355_v53, %v733_v4 }
 0x100   : > { %v879_v7 = vmul.f32 %v824_v51, %v739_v3  ;;  %2444 = vmatprep.mubr.msk.f32.mxu0 %vm928_vm2, %v3370_v5  ;;  %v2380_v15 = vpop.f32.mrb[2].mxu0 }
 0x101   : > { %v878_v9 = vmul.f32 %v819_v49, %v734_v6  ;;  %v2403_v10 = vpop.f32.mrb[4].mxu1  ;;  %v3381_v17 = vadd.f32 %v2380_v15, %v3361_v57  ;;  %v561_v18 = vpop.f32.mrb[3].mxu0 }
 0x102   : > { %894 = vst.msk [vmem:[#allocation2 + $0x18] sm:$0xff] %vm890_vm1, %v879_v7  ;;  %v749_v12 = vadd.f32 %v2403_v10, %v3355_v53  ;;  %v743_v13 = vpop.f32.mrb[5].mxu1  ;;  %v3384_v22 = vadd.f32 %v3361_v57, %v561_v18 }
 0x103   : > { %893 = vst.msk [vmem:[#allocation2 + $0x10] sm:$0xff] %vm890_vm1, %v878_v9  ;;  %v744_v14 = vadd.f32 %v3355_v53, %v743_v13 }
 0x104   : > { %v881_v16 = vmul.f32 %v834_v58, %v749_v12  ;;  %v2383_v31 = vpop.f32.mrb[4].mxu0 }
 0x105   : > { %v880_v19 = vmul.f32 %v829_v60, %v744_v14  ;;  %v2406_v20 = vpop.f32.mrb[6].mxu1  ;;  %v915_v21 = vld [vmem:[#allocation2 + $0x8] sm:$0xff]  ;;  %v3399_v34 = vadd.f32 %v2383_v31, %v3361_v57  ;;  %v571_v35 = vpop.f32.mrb[5].mxu0 }
 0x106   : > { %896 = vst.msk [vmem:[#allocation2 + $0x28] sm:$0xff] %vm890_vm1, %v881_v16  ;;  %v759_v23 = vadd.f32 %v2406_v20, %v3355_v53  ;;  %v753_v24 = vpop.f32.mrb[7].mxu1  ;;  %v914_v25 = vld [vmem:[#allocation2] sm:$0xff]  ;;  %v3406_v39 = vadd.f32 %v3361_v57, %v571_v35 }
 0x107   : > { %895 = vst.msk [vmem:[#allocation2 + $0x20] sm:$0xff] %vm890_vm1, %v880_v19  ;;  %v754_v28 = vadd.f32 %v3355_v53, %v753_v24  ;;  %v3396_v29 = vpack.i.bf16 %v915_v21, %v914_v25  ;;  %v2612_v30 = vpack.c.bf16 %v915_v21, %v914_v25 }
 0x108   : > { %v883_v33 = vmul.f32 %v844_v8, %v759_v23  ;;  %v2386_v46 = vpop.f32.mrb[6].mxu0  ;;  %v874_v8 = vpop.permute.xlu1 %873 }
 0x109   : > { %v882_v36 = vmul.f32 %v839_v11, %v754_v28  ;;  %v2409_v37 = vpop.f32.mrb[8].mxu1  ;;  %2852 = vrot.lane.b32.xlu1 %v3396_v29, %s3117_s12  ;;  %2614 = vmatprep.subr.msk.bf16.mxu0 %vm3390_vm3, %v2612_v30  ;;  %v917_v38 = vld [vmem:[#allocation2 + $0x18] sm:$0xff]  ;;  %v3417_v48 = vadd.f32 %v2386_v46, %v3361_v57  ;;  %v581_v49 = vpop.f32.mrb[7].mxu0 }
 0x10a   : > { %898 = vst.msk [vmem:[#allocation2 + $0x38] sm:$0xff] %vm890_vm1, %v883_v33  ;;  %v769_v40 = vadd.f32 %v2409_v37, %v3355_v53  ;;  %v763_v41 = vpop.f32.mrb[9].mxu1  ;;  %2617 = vmatpush3.bf16.xpose.msk.msra.mxu0 %vm3390_vm3, %v2612_v30  ;;  %v916_v42 = vld [vmem:[#allocation2 + $0x10] sm:$0xff]  ;;  %v3424_v55 = vadd.f32 %v3361_v57, %v581_v49  ;;  %v869_v11 = vpop.permute.xlu0 %868 }
 0x10b   : > { %897 = vst.msk [vmem:[#allocation2 + $0x30] sm:$0xff] %vm890_vm1, %v882_v36  ;;  %v764_v43 = vadd.f32 %v3355_v53, %v763_v41  ;;  %v3414_v44 = vpack.i.bf16 %v917_v38, %v916_v42  ;;  %v2618_v45 = vpack.c.bf16 %v917_v38, %v916_v42 }
 0x10c   : > { %v885_v47 = vmul.f32 %v854_v27, %v769_v40 }
 0x10d   : > { %v884_v51 = vmul.f32 %v849_v32, %v764_v43  ;;  %v2412_v52 = vpop.f32.mrb[10].mxu1  ;;  %2857 = vrot.lane.b32.xlu0 %v3414_v44, %s3117_s12  ;;  %2620 = vmatprep.subr.msk.bf16.mxu0 %vm3390_vm3, %v2618_v45  ;;  %v919_v54 = vld [vmem:[#allocation2 + $0x28] sm:$0xff] }
 0x10e   : > { %900 = vst.msk [vmem:[#allocation2 + $0x48] sm:$0xff] %vm890_vm1, %v885_v47  ;;  %v779_v58 = vadd.f32 %v2412_v52, %v3355_v53  ;;  %v773_v59 = vpop.f32.mrb[11].mxu1  ;;  %v918_v60 = vld [vmem:[#allocation2 + $0x20] sm:$0xff] }
 0x10f   : > { %899 = vst.msk [vmem:[#allocation2 + $0x40] sm:$0xff] %vm890_vm1, %v884_v51  ;;  %v774_v61 = vadd.f32 %v3355_v53, %v773_v59  ;;  %v3430_v62 = vpack.i.bf16 %v919_v54, %v918_v60  ;;  %v2624_v57 = vpack.c.bf16 %v919_v54, %v918_v60  ;;  %v3493_v51 = vld [vmem:[%s3917_s9] sm:$0xff] }
 0x110   : > { %v887_v63 = vmul.f32 %v864_v50, %v779_v58  ;;  %v3488_v50 = vld [vmem:[%s3917_s9 + $0x8] sm:$0xff] }
 0x111   : > { %v886_v0 = vmul.f32 %v859_v56, %v774_v61  ;;  %v2415_v2 = vpop.f32.mrb[12].mxu1  ;;  %2862 = vrot.lane.b32.xlu0 %v3430_v62, %s3117_s12  ;;  %v921_v3 = vld [vmem:[#allocation2 + $0x38] sm:$0xff] }
 0x112   : > { %902 = vst.msk [vmem:[#allocation2 + $0x58] sm:$0xff] %vm890_vm1, %v887_v63  ;;  %v789_v4 = vadd.f32 %v2415_v2, %v3355_v53  ;;  %v783_v6 = vpop.f32.mrb[13].mxu1  ;;  %2623 = vmatpush3.bf16.xpose.msk.msra.mxu0 %vm3390_vm3, %v2618_v45  ;;  %v920_v7 = vld [vmem:[#allocation2 + $0x30] sm:$0xff] }
 0x113   : > { %901 = vst.msk [vmem:[#allocation2 + $0x50] sm:$0xff] %vm890_vm1, %v886_v0  ;;  %v784_v9 = vadd.f32 %v3355_v53, %v783_v6  ;;  %2626 = vmatprep.subr.msk.bf16.mxu0 %vm3390_vm3, %v2624_v57  ;;  %v3442_v10 = vpack.i.bf16 %v921_v3, %v920_v7  ;;  %v2630_v18 = vpack.c.bf16 %v921_v3, %v920_v7  ;;  %v3518_v7 = vld [vmem:[%s3917_s9 + $0x10] sm:$0xff] }
 0x114   : > { %v889_v12 = vmul.f32 %v874_v8, %v789_v4  ;;  %v3510_v4 = vld [vmem:[%s3917_s9 + $0x18] sm:$0xff]  ;;  %v3523_v8 = vld [vmem:[%s3917_s9 + $0x20] sm:$0xff] }
 0x115   : > { %v888_v13 = vmul.f32 %v869_v11, %v784_v9  ;;  %2867 = vrot.lane.b32.xlu1 %v3442_v10, %s3117_s12  ;;  %v923_v14 = vld [vmem:[#allocation2 + $0x48] sm:$0xff] }
 0x116   : > { %905 = vst.msk [vmem:[#allocation2 + $0x68] sm:$0xf] %vm904_vm4, %v889_v12  ;;  %v922_v15 = vld [vmem:[#allocation2 + $0x40] sm:$0xff]  ;;  %v3533_v12 = vld [vmem:[%s3917_s9 + $0x28] sm:$0xff] }
 0x117   : > { %903 = vst.msk [vmem:[#allocation2 + $0x60] sm:$0xff] %vm890_vm1, %v888_v13  ;;  %v3447_v16 = vpack.i.bf16 %v923_v14, %v922_v15  ;;  %v2636_v25 = vpack.c.bf16 %v923_v14, %v922_v15  ;;  %v3541_v14 = vld [vmem:[%s3917_s9 + $0x30] sm:$0xff]  ;;  %v3546_v15 = vld [vmem:[%s3917_s9 + $0x38] sm:$0xff] }
 0x119   : > { %v925_v53 = vld [vmem:[#allocation2 + $0x58] sm:$0xff] }
 0x11a   : > { %2629 = vmatpush3.bf16.xpose.msk.msra.mxu0 %vm3390_vm3, %v2624_v57  ;;  %v924_v19 = vld [vmem:[#allocation2 + $0x50] sm:$0xff] }
 0x11b   : > { %2632 = vmatprep.subr.msk.bf16.mxu0 %vm3390_vm3, %v2630_v18  ;;  %v3453_v20 = vpack.i.bf16 %v925_v53, %v924_v19  ;;  %v2642_v27 = vpack.c.bf16 %v925_v53, %v924_v19 }
 0x11d   : > { %v927_v21 = vld [vmem:[#allocation2 + $0x68] sm:$0xf] }
 0x11e   : > { %v926_v23 = vld [vmem:[#allocation2 + $0x60] sm:$0xff] }
 0x11f   : > { %v3455_v24 = vpack.i.bf16 %v927_v21, %v926_v23  ;;  %v2648_v28 = vpack.c.bf16 %v927_v21, %v926_v23 }
 0x122   : > { %2635 = vmatpush3.bf16.xpose.msk.msra.mxu0 %vm3390_vm3, %v2630_v18 }
 0x123   : > { %2638 = vmatprep.subr.msk.bf16.mxu0 %vm3390_vm3, %v2636_v25 }
 0x12a   : > { %2641 = vmatpush3.bf16.xpose.msk.msra.mxu0 %vm3390_vm3, %v2636_v25 }
 0x12b   : > { %2644 = vmatprep.subr.msk.bf16.mxu0 %vm3390_vm3, %v2642_v27 }
 0x132   : > { %2647 = vmatpush3.bf16.xpose.msk.msra.mxu0 %vm3390_vm3, %v2642_v27 }
 0x133   : > { %2650 = vmatprep.subr.msk.bf16.mxu0 %vm3390_vm3, %v2648_v28 }
 0x13a   : > { %2653 = vmatpush3.bf16.xpose.msk.msra.mxu0 %vm3390_vm3, %v2648_v28 }
 0x141   : > { %2445 = vmatmul.mubr.msk.f32.vlgmr.msra.gmra.mrb[8].mxu0 %vm928_vm2, %v3365_v1 }
 0x142   : > { %2447 = vmatprep.mubr.msk.f32.mxu0 %vm928_vm2, %v3384_v22 }
 0x145   : > { %2448 = vmatmul.mubr.msk.f32.gmra.mrb[10].mxu0 %vm928_vm2, %v3381_v17 }
 0x146   : > { %2450 = vmatprep.mubr.msk.f32.mxu0 %vm928_vm2, %v3406_v39 }
 0x149   : > { %2451 = vmatmul.mubr.msk.f32.gmra.mrb[12].mxu0 %vm928_vm2, %v3399_v34 }
 0x14a   : > { %2453 = vmatprep.mubr.msk.f32.mxu0 %vm928_vm2, %v3424_v55 }
 0x14d   : > { %2454 = vmatmul.mubr.msk.f32.gmra.mrb[14].mxu0 %vm928_vm2, %v3417_v48 }
 0x17b   : > { %v2853_v30 = vpop.permute.xlu1 %2852 }
 0x17c   : > { %v2855_v31 = vunpack.i.h.bf16 %v2853_v30  ;;  %v2854_v32 = vunpack.i.l.bf16 %v2853_v30 }
 0x17e   : > { %v2654_v33 = vpack.c.bf16 %v2855_v31, %v2854_v32 }
 0x17f   : > { %v2858_v35 = vpop.permute.xlu0 %2857 }
 0x180   : > { %v2860_v36 = vunpack.i.h.bf16 %v2858_v35  ;;  %v2859_v37 = vunpack.i.l.bf16 %v2858_v35  ;;  %2655 = vmatprep.subr.bf16.mxu1 %v2654_v33 }
 0x181   : > { %2657 = vmatpush3.bf16.msra.mxu1 %v2654_v33 }
 0x182   : > { %v2658_v38 = vpack.c.bf16 %v2860_v36, %v2859_v37 }
 0x183   : > { %v2863_v40 = vpop.permute.xlu0 %2862 }
 0x184   : > { %v2865_v41 = vunpack.i.h.bf16 %v2863_v40  ;;  %v2864_v42 = vunpack.i.l.bf16 %v2863_v40  ;;  %2659 = vmatprep.subr.bf16.mxu1 %v2658_v38 }
 0x185   : > { %2661 = vmatpush3.bf16.msra.mxu1 %v2658_v38 }
 0x186   : > { %v2662_v43 = vpack.c.bf16 %v2865_v41, %v2864_v42 }
 0x187   : > { %v2868_v45 = vpop.permute.xlu1 %2867 }
 0x188   : > { %v2870_v46 = vunpack.i.h.bf16 %v2868_v45  ;;  %v2869_v47 = vunpack.i.l.bf16 %v2868_v45  ;;  %2663 = vmatprep.subr.bf16.mxu1 %v2662_v43 }
 0x189   : > { %2665 = vmatpush3.bf16.msra.mxu1 %v2662_v43 }
 0x18a   : > { %v2666_v49 = vpack.c.bf16 %v2870_v46, %v2869_v47 }
 0x18c   : > { %2667 = vmatprep.subr.bf16.mxu1 %v2666_v49 }
 0x18d   : > { %2669 = vmatpush3.bf16.msra.mxu1 %v2666_v49 }
 0x214   : > { %v2446_v52 = vpop.f32.mrb[8].mxu0 }
 0x215   : > { %v1067_v54 = vadd.f32 %v2446_v52, %v3488_v50  ;;  %v1061_v56 = vpop.f32.mrb[9].mxu0 }
 0x216   : > { %v1062_v58 = vadd.f32 %v1061_v56, %v3493_v51 }
 0x217   : > { %v1104_v59 = vsel %vm1100_vm5, %v1067_v54, -inf }
 0x218   : > { %1105 = vmax.xlane.f32.xlu1 %v1104_v59  ;;  %v1101_v60 = vsel %vm1100_vm5, %v1062_v58, -inf  ;;  %v2449_v61 = vpop.f32.mrb[10].mxu0 }
 0x219   : > { %1102 = vmax.xlane.f32.xlu0 %v1101_v60  ;;  %v1071_v63 = vpop.f32.mrb[11].mxu0  ;;  %v3513_v6 = vadd.f32 %v2449_v61, %v3510_v4 }
 0x21a   : > { %v3526_v9 = vadd.f32 %v1071_v63, %v3518_v7 }
 0x21b   : > { %v1110_v11 = vsel %vm1100_vm5, %v3513_v6, -inf }
 0x21c   : > { %v2452_v0 = vpop.f32.mrb[12].mxu0  ;;  %v1107_v53 = vsel %vm1100_vm5, %v3526_v9, -inf }
 0x21d   : > { %v1081_v2 = vpop.f32.mrb[13].mxu0  ;;  %v3549_v18 = vadd.f32 %v2452_v0, %v3533_v12 }
 0x21e   : > { %v3536_v13 = vadd.f32 %v1081_v2, %v3523_v8 }
 0x21f   : > { %v1116_v25 = vsel %vm1100_vm5, %v3549_v18, -inf }
 0x220   : > { %v2455_v57 = vpop.f32.mrb[14].mxu0  ;;  %v1113_v21 = vsel %vm1100_vm5, %v3536_v13, -inf }
 0x221   : > { %v1091_v3 = vpop.f32.mrb[15].mxu0  ;;  %v3559_v23 = vadd.f32 %v2455_v57, %v3546_v15 }
 0x222   : > { %v3554_v19 = vadd.f32 %v1091_v3, %v3541_v14 }
 0x223   : > { %v1122_v28 = vsel %vm1100_vm5, %v3559_v23, -inf }
 0x224   : > { %v1119_v27 = vsel %vm1100_vm5, %v3554_v19, -inf }
 0x229   : > { %2877 = vrot.lane.b32.xlu1 %v3453_v20, %s3117_s12 }
 0x22d   : > { %2882 = vrot.lane.b32.xlu1 %v3455_v24, %s3117_s12 }
 0x22f   : > { %2872 = vrot.lane.b32.xlu0 %v3447_v16, %s3117_s12  ;;  %s3856_s12 = scalar_lea.sflag [#allocation4], %s414_s23 }
 0x231   : > { %2887 = vrot.lane.b32.xlu1 %v3396_v29, %s3118_s24 }
 0x24e   : > { %1111 = vmax.xlane.f32.xlu0 %v1110_v11 }
 0x252   : > { %1108 = vmax.xlane.f32.xlu0 %v1107_v53 }
 0x255   : > { %1114 = vmax.xlane.f32.xlu1 %v1113_v21 }
 0x256   : > { %1117 = vmax.xlane.f32.xlu0 %v1116_v25 }
 0x259   : > { %1120 = vmax.xlane.f32.xlu1 %v1119_v27 }
 0x25a   : > { %1123 = vmax.xlane.f32.xlu0 %v1122_v28 }
 0x26a   : > { %2897 = vrot.lane.b32.xlu1 %v3430_v62, %s3118_s24 }
 0x2a5   : > { %v1106_v30 = vpop.xlane.xlu1 %1105 }
 0x2a6   : > { %v1126_v31 = vsub.f32 %v1067_v54, %v1106_v30  ;;  %v1103_v32 = vpop.xlane.xlu0 %1102 }
 0x2a7   : > { %v1125_v33 = vsub.f32 %v1062_v58, %v1103_v32 }
 0x2a8   : > { %v1135_v35 = vmul.f32 1.442695, %v1126_v31 }
 0x2a9   : > { %v1133_v36 = vmul.f32 1.442695, %v1125_v33  ;;  %v2878_v37 = vpop.permute.xlu1 %2877 }
 0x2aa   : > { %2956 = vpow2.f32 %v1135_v35  ;;  %v2880_v38 = vunpack.i.h.bf16 %v2878_v37  ;;  %v2873_v40 = vpop.permute.xlu0 %2872  ;;  %v2879_v41 = vunpack.i.l.bf16 %v2878_v37 }
 0x2ab   : > { %2958 = vpow2.f32 %v1133_v36  ;;  %v2875_v42 = vunpack.i.h.bf16 %v2873_v40  ;;  %v2874_v43 = vunpack.i.l.bf16 %v2873_v40 }
 0x2ac   : > { %v2674_v47 = vpack.c.bf16 %v2880_v38, %v2879_v41 }
 0x2ad   : > { %v2670_v45 = vpack.c.bf16 %v2875_v42, %v2874_v43  ;;  %v2883_v46 = vpop.permute.xlu1 %2882 }
 0x2ae   : > { %v2885_v49 = vunpack.i.h.bf16 %v2883_v46  ;;  %v2884_v52 = vunpack.i.l.bf16 %v2883_v46 }
 0x2af   : > { %2671 = vmatprep.subr.bf16.mxu1 %v2670_v45 }
 0x2b0   : > { %2673 = vmatpush3.bf16.msra.mxu1 %v2670_v45  ;;  %v2678_v58 = vpack.c.bf16 %v2885_v49, %v2884_v52 }
 0x2b1   : > { %v2888_v54 = vpop.permute.xlu1 %2887  ;;  %2675 = vmatprep.subr.bf16.mxu1 %v2674_v47 }
 0x2b2   : > { %v2890_v59 = vunpack.i.h.bf16 %v2888_v54  ;;  %v2889_v60 = vunpack.i.l.bf16 %v2888_v54 }
 0x2b4   : > { %v3573_v61 = vpop.eup %2956  ;;  %2677 = vmatpush3.bf16.msra.mxu1 %v2674_v47  ;;  %v3583_v57 = vpack.c.bf16 %v2890_v59, %v2889_v60 }
 0x2b5   : > { %v3575_v63 = vpop.eup %2958  ;;  %2680 = vmatprep.subr.msk.bf16.mxu1 %vm3569_vm8, %v2678_v58  ;;  %v1152_v0 = vsel %vm1100_vm5, %v3573_v61, 0.0 }
 0x2b6   : > { %1153 = vadd.xlane.f32.xlu0 %v1152_v0  ;;  %v1149_v2 = vsel %vm1100_vm5, %v3575_v63, 0.0 }
 0x2b7   : > { %1150 = vadd.xlane.f32.xlu1 %v1149_v2 }
 0x2b8   : > { %2683 = vmatpush3.bf16.msk.msra.mxu1 %vm3569_vm8, %v2678_v58 }
 0x2b9   : > { %2686 = vmatprep.subr.msk.bf16.mxu1 %vm3390_vm3, %v3583_v57 }
 0x2c8   : > { %2902 = vrot.lane.b32.xlu1 %v3442_v10, %s3118_s24 }
 0x2cc   : > { %2892 = vrot.lane.b32.xlu0 %v3414_v44, %s3118_s24 }
 0x2db   : > { %v1112_v3 = vpop.xlane.xlu0 %1111 }
 0x2dc   : > { %v1128_v11 = vsub.f32 %v3513_v6, %v1112_v3 }
 0x2de   : > { %v1139_v53 = vmul.f32 1.442695, %v1128_v11 }
 0x2df   : > { %v1109_v21 = vpop.xlane.xlu0 %1108 }
 0x2e0   : > { %2960 = vpow2.f32 %v1139_v53  ;;  %v1127_v25 = vsub.f32 %v3526_v9, %v1109_v21 }
 0x2e2   : > { %v1137_v27 = vmul.f32 1.442695, %v1127_v25  ;;  %v1115_v28 = vpop.xlane.xlu1 %1114 }
 0x2e3   : > { %v1129_v30 = vsub.f32 %v3536_v13, %v1115_v28  ;;  %v1118_v31 = vpop.xlane.xlu0 %1117 }
 0x2e4   : > { %2962 = vpow2.f32 %v1137_v27  ;;  %v1130_v32 = vsub.f32 %v3549_v18, %v1118_v31 }
 0x2e5   : > { %v1141_v33 = vmul.f32 1.442695, %v1129_v30 }
 0x2e6   : > { %v1143_v35 = vmul.f32 1.442695, %v1130_v32  ;;  %v1121_v36 = vpop.xlane.xlu1 %1120 }
 0x2e7   : > { %v1124_v37 = vpop.xlane.xlu0 %1123  ;;  %v1131_v9 = vsub.f32 %v3554_v19, %v1121_v36 }
 0x2e8   : > { %2964 = vpow2.f32 %v1143_v35  ;;  %v1132_v6 = vsub.f32 %v3559_v23, %v1124_v37 }
 0x2e9   : > { %2966 = vpow2.f32 %v1141_v33  ;;  %v1145_v18 = vmul.f32 1.442695, %v1131_v9 }
 0x2ea   : > { %v3599_v38 = vpop.eup %2960  ;;  %v1147_v40 = vmul.f32 1.442695, %v1132_v6 }
 0x2eb   : > { %v1158_v13 = vsel %vm1100_vm5, %v3599_v38, 0.0 }
 0x2ec   : > { %1159 = vadd.xlane.f32.xlu1 %v1158_v13  ;;  %2968 = vpow2.f32 %v1147_v40 }
 0x2ed   : > { %2970 = vpow2.f32 %v1145_v18 }
 0x2ee   : > { %v3604_v41 = vpop.eup %2962 }
 0x2ef   : > { %v1155_v42 = vsel %vm1100_vm5, %v3604_v41, 0.0 }
 0x2f0   : > { %1156 = vadd.xlane.f32.xlu0 %v1155_v42 }
 0x2f2   : > { %v3608_v43 = vpop.eup %2964 }
 0x2f3   : > { %v1164_v23 = vsel %vm1100_vm5, %v3608_v43, 0.0  ;;  %v3612_v19 = vpop.eup %2966 }
 0x2f4   : > { %1165 = vadd.xlane.f32.xlu0 %v1164_v23  ;;  %v1161_v45 = vsel %vm1100_vm5, %v3612_v19, 0.0 }
 0x2f6   : > { %v3616_v46 = vpop.eup %2968 }
 0x2f7   : > { %v1170_v47 = vsel %vm1100_vm5, %v3616_v46, 0.0  ;;  %v3620_v49 = vpop.eup %2970 }
 0x2f8   : > { %1162 = vadd.xlane.f32.xlu0 %v1161_v45  ;;  %v1167_v52 = vsel %vm1100_vm5, %v3620_v49, 0.0 }
 0x2fc   : > { %1171 = vadd.xlane.f32.xlu0 %v1170_v47 }
 0x2fd   : > { %2912 = vrot.lane.b32.xlu1 %v3453_v20, %s3118_s24 }
 0x300   : > { %1168 = vadd.xlane.f32.xlu0 %v1167_v52 }
 0x301   : > { %2917 = vrot.lane.b32.xlu1 %v3455_v24, %s3118_s24 }
 0x305   : > { %1362 = vrot.lane.b32.xlu1 %v3370_v5, %s3118_s24 }
 0x309   : > { %1364 = vrot.lane.b32.xlu1 %v3365_v1, %s3118_s24  ;;  %v2898_v1 = vpop.permute.xlu1 %2897 }
 0x30a   : > { %v2899_v59 = vunpack.i.l.bf16 %v2898_v1 }
 0x30d   : > { %1368 = vrot.lane.b32.xlu1 %v3381_v17, %s3118_s24 }
 0x311   : > { %1372 = vrot.lane.b32.xlu1 %v3399_v34, %s3118_s24 }
 0x315   : > { %1376 = vrot.lane.b32.xlu1 %v3417_v48, %s3118_s24 }
 0x316   : > { %2907 = vrot.lane.b32.xlu0 %v3447_v16, %s3118_s24 }
 0x319   : > { %2922 = vrot.lane.b32.xlu1 %v3396_v29, %s3120_s25 }
 0x31a   : > { %1366 = vrot.lane.b32.xlu0 %v3384_v22, %s3118_s24 }
 0x31e   : > { %1370 = vrot.lane.b32.xlu0 %v3406_v39, %s3118_s24 }
 0x322   : > { %1374 = vrot.lane.b32.xlu0 %v3424_v55, %s3118_s24  ;;  %s416_s24 = scalar_lea.vmem [#allocation3], %s2128_s22  ;;  %s3122_s22 = smov [#allocation3]  }
 0x323   : > { %s2019_s19 = sshll.u32 %s416_s24, 4  ;;  %s3024_s18 = sshll.u32 %s3122_s22, 4  ;;  %s3850_s19 = int_to_ptr.vmem [resolvable:$true] %s2019_s19  ;;  %s3025_s18 = int_to_ptr.vmem [resolvable:$false] %s3024_s18 }
 0x324   : > { %p3027_p4 = scmp.lt.s32.totalorder %s3850_s19, %s3025_s18 }
 0x326   : > { %2927 = vrot.lane.b32.xlu0 %v3414_v44, %s3120_s25  ;;  %v2900_v44 = vunpack.i.h.bf16 %v2898_v1 }
 0x328   : > { %v2696_v60 = vpack.c.bf16 %v2900_v44, %v2899_v59 }
 0x343   : > { %v1154_v5 = vpop.xlane.xlu0 %1153 }
 0x344   : > { %2972 = vrcp.f32 %v1154_v5  ;;  %v1151_v17 = vpop.xlane.xlu1 %1150 }
 0x345   : > { %2974 = vrcp.f32 %v1151_v17 }
 0x347   : > { %v2893_v34 = vpop.permute.xlu0 %2892 }
 0x348   : > { %v2895_v54 = vunpack.i.h.bf16 %v2893_v34  ;;  %v2894_v58 = vunpack.i.l.bf16 %v2893_v34  ;;  %v2903_v0 = vpop.permute.xlu1 %2902 }
 0x34a   : > { %v2690_v55 = vpack.c.bf16 %v2895_v54, %v2894_v58 }
 0x34e   : > { %v2973_v48 = vpop.eup %2972 }
 0x34f   : > { %v2975_v29 = vpop.eup %2974  ;;  %v1182_v39 = vmul.f32 %v2973_v48, %v3573_v61  ;;  %v2905_v61 = vunpack.i.h.bf16 %v2903_v0 }
 0x350   : > { %v1181_v22 = vmul.f32 %v2975_v29, %v3575_v63  ;;  %v2904_v63 = vunpack.i.l.bf16 %v2903_v0 }
 0x352   : > { %2484 = vmatprep.mubr.msk.f32.mxu1 %vm1100_vm5, %v1181_v22  ;;  %v2702_v2 = vpack.c.bf16 %v2905_v61, %v2904_v63 }
 0x353   : > { %2485 = vmatmul.mubr.msk.f32.vlgmr.msra.gmra.mrb[14].mxu1 %vm1100_vm5, %v1182_v39 }
 0x354   : > { %2689 = vmatpush3.bf16.xpose.msk.msra.mxu1 %vm3390_vm3, %v3583_v57 }
 0x355   : > { %2692 = vmatprep.subr.msk.bf16.mxu1 %vm3390_vm3, %v2690_v55 }
 0x35c   : > { %2695 = vmatpush3.bf16.xpose.msk.msra.mxu1 %vm3390_vm3, %v2690_v55 }
 0x35d   : > { %2698 = vmatprep.subr.msk.bf16.mxu1 %vm3390_vm3, %v2696_v60 }
 0x364   : > { %2701 = vmatpush3.bf16.xpose.msk.msra.mxu1 %vm3390_vm3, %v2696_v60 }
 0x365   : > { %2704 = vmatprep.subr.msk.bf16.mxu1 %vm3390_vm3, %v2702_v2 }
 0x36c   : > { %2707 = vmatpush3.bf16.xpose.msk.msra.mxu1 %vm3390_vm3, %v2702_v2 }
 0x379   : > { %v1160_v57 = vpop.xlane.xlu1 %1159 }
 0x37a   : > { %2976 = vrcp.f32 %v1160_v57 }
 0x37d   : > { %v2913_v3 = vpop.permute.xlu1 %2912  ;;  %v1157_v11 = vpop.xlane.xlu0 %1156 }
 0x37e   : > { %2978 = vrcp.f32 %v1157_v11  ;;  %v2915_v40 = vunpack.i.h.bf16 %v2913_v3  ;;  %v2914_v23 = vunpack.i.l.bf16 %v2913_v3 }
 0x380   : > { %v2714_v5 = vpack.c.bf16 %v2915_v40, %v2914_v23 }
 0x381   : > { %v2918_v53 = vpop.permute.xlu1 %2917  ;;  %v1166_v21 = vpop.xlane.xlu0 %1165 }
 0x382   : > { %2980 = vrcp.f32 %v1166_v21  ;;  %v2919_v54 = vunpack.i.l.bf16 %v2918_v53 }
 0x384   : > { %v2977_v28 = vpop.eup %2976 }
 0x385   : > { %v1363_v25 = vpop.permute.xlu1 %1362  ;;  %v1163_v27 = vpop.xlane.xlu0 %1162  ;;  %v1184_v35 = vmul.f32 %v2977_v28, %v3599_v38 }
 0x386   : > { %2982 = vrcp.f32 %v1163_v27 }
 0x388   : > { %v2979_v30 = vpop.eup %2978 }
 0x389   : > { %v1365_v31 = vpop.permute.xlu1 %1364  ;;  %v1172_v32 = vpop.xlane.xlu0 %1171  ;;  %v1183_v33 = vmul.f32 %v2979_v30, %v3604_v41 }
 0x38a   : > { %2984 = vrcp.f32 %v1172_v32 }
 0x38b   : > { %2487 = vmatprep.mubr.msk.f32.mxu1 %vm1100_vm5, %v1183_v33 }
 0x38c   : > { %2488 = vmatmul.mubr.msk.f32.gmra.mrb[16].mxu1 %vm1100_vm5, %v1184_v35  ;;  %v2981_v6 = vpop.eup %2980 }
 0x38d   : > { %v1369_v36 = vpop.permute.xlu1 %1368  ;;  %v1169_v37 = vpop.xlane.xlu0 %1168  ;;  %v1186_v38 = vmul.f32 %v2981_v6, %v3608_v43  ;;  %v2920_v43 = vunpack.i.h.bf16 %v2918_v53 }
 0x38e   : > { %2986 = vrcp.f32 %v1169_v37 }
 0x38f   : > { %v2720_v59 = vpack.c.bf16 %v2920_v43, %v2919_v54 }
 0x390   : > { %v2983_v9 = vpop.eup %2982 }
 0x391   : > { %v1373_v13 = vpop.permute.xlu1 %1372  ;;  %v2908_v18 = vpop.permute.xlu0 %2907  ;;  %v1185_v42 = vmul.f32 %v2983_v9, %v3612_v19 }
 0x392   : > { %v2910_v45 = vunpack.i.h.bf16 %v2908_v18  ;;  %v2909_v41 = vunpack.i.l.bf16 %v2908_v18 }
 0x393   : > { %2490 = vmatprep.mubr.msk.f32.mxu1 %vm1100_vm5, %v1185_v42 }
 0x394   : > { %v2708_v47 = vpack.c.bf16 %v2910_v45, %v2909_v41  ;;  %2491 = vmatmul.mubr.msk.f32.gmra.mrb[18].mxu1 %vm1100_vm5, %v1186_v38  ;;  %v2985_v17 = vpop.eup %2984 }
 0x395   : > { %v1377_v52 = vpop.permute.xlu1 %1376  ;;  %v1367_v1 = vpop.permute.xlu0 %1366  ;;  %v1188_v39 = vmul.f32 %v2985_v17, %v3616_v46 }
 0x396   : > { %2710 = vmatprep.subr.msk.bf16.mxu1 %vm3390_vm3, %v2708_v47 }
 0x397   : > { %2713 = vmatpush3.bf16.xpose.msk.msra.mxu1 %vm3390_vm3, %v2708_v47 }
 0x398   : > { %v2987_v19 = vpop.eup %2986  ;;  %2716 = vmatprep.subr.msk.bf16.mxu1 %vm3390_vm3, %v2714_v5 }
 0x399   : > { %v2923_v34 = vpop.permute.xlu1 %2922  ;;  %v1371_v48 = vpop.permute.xlu0 %1370  ;;  %v1187_v29 = vmul.f32 %v2987_v19, %v3620_v49 }
 0x39a   : > { %v2925_v58 = vunpack.i.h.bf16 %v2923_v34  ;;  %v2924_v22 = vunpack.i.l.bf16 %v2923_v34 }
 0x39b   : > { %2493 = vmatprep.mubr.msk.f32.mxu1 %vm1100_vm5, %v1187_v29 }
 0x39c   : > { %v2726_v55 = vpack.c.bf16 %v2925_v58, %v2924_v22  ;;  %2494 = vmatmul.mubr.msk.f32.gmra.mrb[20].mxu1 %vm1100_vm5, %v1188_v39 }
 0x39d   : > { %v1375_v44 = vpop.permute.xlu0 %1374  ;;  %2524 = vmatprep.mubr.msk.f32.mxu1 %vm928_vm2, %v1363_v25 }
 0x39e   : > { %2727 = vmatprep.subr.bf16.mxu0 %v2726_v55 }
 0x39f   : > { %2719 = vmatpush3.bf16.xpose.msk.msra.mxu1 %vm3390_vm3, %v2714_v5  ;;  %2729 = vmatpush3.bf16.msra.mxu0 %v2726_v55 }
 0x3a0   : > { %2722 = vmatprep.subr.msk.bf16.mxu1 %vm3390_vm3, %v2720_v59 }
 0x3a1   : > { %v2928_v49 = vpop.permute.xlu0 %2927 }
 0x3a2   : > { %v2930_v60 = vunpack.i.h.bf16 %v2928_v49  ;;  %v2929_v46 = vunpack.i.l.bf16 %v2928_v49 }
 0x3a4   : > { %v2730_v0 = vpack.c.bf16 %v2930_v60, %v2929_v46 }
 0x3a6   : > { %2731 = vmatprep.subr.bf16.mxu0 %v2730_v0 }
 0x3a7   : > { %2725 = vmatpush3.bf16.xpose.msk.msra.mxu1 %vm3390_vm3, %v2720_v59  ;;  %2733 = vmatpush3.bf16.msra.mxu0 %v2730_v0 }
 0x3ae   : > { %2525 = vmatmul.mubr.msk.f32.vlgmr.msra.gmra.mrb[22].mxu1 %vm928_vm2, %v1365_v31 }
 0x3af   : > { %2527 = vmatprep.mubr.msk.f32.mxu1 %vm928_vm2, %v1367_v1 }
 0x3b2   : > { %2528 = vmatmul.mubr.msk.f32.gmra.mrb[24].mxu1 %vm928_vm2, %v1369_v36 }
 0x3b3   : > { %2530 = vmatprep.mubr.msk.f32.mxu1 %vm928_vm2, %v1371_v48 }
 0x3b6   : > { %2531 = vmatmul.mubr.msk.f32.gmra.mrb[26].mxu1 %vm928_vm2, %v1373_v13 }
 0x3b7   : > { %2533 = vmatprep.mubr.msk.f32.mxu1 %vm928_vm2, %v1375_v44 }
 0x3ba   : > { %2534 = vmatmul.mubr.msk.f32.gmra.mrb[28].mxu1 %vm928_vm2, %v1377_v52 }
 0x426   : > { %v3701_v61 = vpop.f32.mrb[14].mxu1 }
 0x427   : > { %v3703_v63 = vpop.f32.mrb[15].mxu1 }
 0x45f   : > { %v3705_v26 = vpop.f32.mrb[16].mxu1 }
 0x460   : > { %v3707_v2 = vpop.f32.mrb[17].mxu1 }
 0x467   : > { %v3709_v57 = vpop.f32.mrb[18].mxu1 }
 0x468   : > { %v3711_v3 = vpop.f32.mrb[19].mxu1 }
 0x46f   : > { %v3713_v11 = vpop.f32.mrb[20].mxu1 }
 0x470   : > { %v3715_v53 = vpop.f32.mrb[21].mxu1 }
 0x481   : > { %v2526_v21 = vpop.f32.mrb[22].mxu1 }
 0x482   : > { %v1522_v25 = vadd.f32 %v2526_v21, %v3488_v50  ;;  %v1516_v27 = vpop.f32.mrb[23].mxu1 }
 0x483   : > { %v1517_v28 = vadd.f32 %v1516_v27, %v3493_v51 }
 0x484   : > { %v1558_v30 = vsel %vm1100_vm5, %v1522_v25, -inf }
 0x485   : > { %1559 = vmax.xlane.f32.xlu1 %v1558_v30  ;;  %v2529_v31 = vpop.f32.mrb[24].mxu1  ;;  %v1555_v32 = vsel %vm1100_vm5, %v1517_v28, -inf }
 0x486   : > { %v1532_v33 = vadd.f32 %v2529_v31, %v3510_v4  ;;  %v1526_v35 = vpop.f32.mrb[25].mxu1  ;;  %1556 = vmax.xlane.f32.xlu0 %v1555_v32 }
 0x487   : > { %v1527_v37 = vadd.f32 %v1526_v35, %v3518_v7 }
 0x488   : > { %v1564_v36 = vsel %vm1100_vm5, %v1532_v33, -inf }
 0x489   : > { %v2532_v6 = vpop.f32.mrb[26].mxu1  ;;  %v1561_v18 = vsel %vm1100_vm5, %v1527_v37, -inf }
 0x48a   : > { %v1536_v9 = vpop.f32.mrb[27].mxu1  ;;  %1565 = vmax.xlane.f32.xlu0 %v1564_v36  ;;  %v1542_v51 = vadd.f32 %v2532_v6, %v3533_v12 }
 0x48b   : > { %v1537_v50 = vadd.f32 %v1536_v9, %v3523_v8 }
 0x48c   : > { %v1570_v8 = vsel %vm1100_vm5, %v1542_v51, -inf }
 0x48d   : > { %v2535_v40 = vpop.f32.mrb[28].mxu1  ;;  %v1567_v13 = vsel %vm1100_vm5, %v1537_v50, -inf }
 0x48e   : > { %v1546_v42 = vpop.f32.mrb[29].mxu1  ;;  %1568 = vmax.xlane.f32.xlu1 %v1567_v13  ;;  %1562 = vmax.xlane.f32.xlu0 %v1561_v18  ;;  %v1552_v7 = vadd.f32 %v2535_v40, %v3546_v15 }
 0x48f   : > { %v3729_v4 = vadd.f32 %v1546_v42, %v3541_v14 }
 0x490   : > { %v1576_v12 = vsel %vm1100_vm5, %v1552_v7, -inf }
 0x491   : > { %v1573_v23 = vsel %vm1100_vm5, %v3729_v4, -inf }
 0x492   : > { %1574 = vmax.xlane.f32.xlu1 %v1573_v23  ;;  %1571 = vmax.xlane.f32.xlu0 %v1570_v8 }
 0x496   : > { %1577 = vmax.xlane.f32.xlu0 %v1576_v12 }
 0x4a3   : > { %2932 = vrot.lane.b32.xlu1 %v3430_v62, %s3120_s25 }
 0x512   : > { %v1560_v45 = vpop.xlane.xlu1 %1559 }
 0x513   : > { %v1580_v41 = vsub.f32 %v1522_v25, %v1560_v45  ;;  %v1557_v38 = vpop.xlane.xlu0 %1556 }
 0x514   : > { %v1579_v14 = vsub.f32 %v1517_v28, %v1557_v38 }
 0x515   : > { %v1589_v47 = vmul.f32 1.442695, %v1580_v41 }
 0x516   : > { %v1587_v52 = vmul.f32 1.442695, %v1579_v14 }
 0x517   : > { %2988 = vpow2.f32 %v1589_v47  ;;  %v1566_v15 = vpop.xlane.xlu0 %1565 }
 0x518   : > { %v1582_v1 = vsub.f32 %v1532_v33, %v1566_v15  ;;  %2990 = vpow2.f32 %v1587_v52 }
 0x51a   : > { %v1593_v5 = vmul.f32 1.442695, %v1582_v1 }
 0x51b   : > { %v1569_v17 = vpop.xlane.xlu1 %1568  ;;  %v1563_v19 = vpop.xlane.xlu0 %1562 }
 0x51c   : > { %v1581_v43 = vsub.f32 %v1527_v37, %v1563_v19  ;;  %2992 = vpow2.f32 %v1593_v5  ;;  %v1583_v48 = vsub.f32 %v1537_v50, %v1569_v17 }
 0x51e   : > { %v1591_v34 = vmul.f32 1.442695, %v1581_v43  ;;  %v1595_v44 = vmul.f32 1.442695, %v1583_v48 }
 0x51f   : > { %v1575_v29 = vpop.xlane.xlu1 %1574  ;;  %v1572_v54 = vpop.xlane.xlu0 %1571 }
 0x520   : > { %v1584_v62 = vsub.f32 %v1542_v51, %v1572_v54  ;;  %2994 = vpow2.f32 %v1591_v34  ;;  %v1585_v6 = vsub.f32 %v3729_v4, %v1575_v29 }
 0x521   : > { %v3738_v58 = vpop.eup %2988 }
 0x522   : > { %v1597_v22 = vmul.f32 1.442695, %v1584_v62  ;;  %v1606_v39 = vsel %vm1100_vm5, %v3738_v58, 0.0  ;;  %v2991_v55 = vpop.eup %2990  ;;  %v1599_v9 = vmul.f32 1.442695, %v1585_v6 }
 0x523   : > { %v2933_v59 = vpop.permute.xlu1 %2932  ;;  %1607 = vadd.xlane.f32.xlu0 %v1606_v39  ;;  %v1603_v0 = vsel %vm1100_vm5, %v2991_v55, 0.0  ;;  %v1578_v35 = vpop.xlane.xlu0 %1577 }
 0x524   : > { %v2935_v49 = vunpack.i.h.bf16 %v2933_v59  ;;  %v2934_v60 = vunpack.i.l.bf16 %v2933_v59  ;;  %2996 = vpow2.f32 %v1597_v22  ;;  %v1586_v36 = vsub.f32 %v1552_v7, %v1578_v35 }
 0x525   : > { %2998 = vpow2.f32 %v1595_v44 }
 0x526   : > { %v2734_v46 = vpack.c.bf16 %v2935_v49, %v2934_v60  ;;  %v3743_v21 = vpop.eup %2992  ;;  %v1601_v37 = vmul.f32 1.442695, %v1586_v36 }
 0x527   : > { %1604 = vadd.xlane.f32.xlu0 %v1603_v0  ;;  %v1612_v25 = vsel %vm1100_vm5, %v3743_v21, 0.0 }
 0x528   : > { %2735 = vmatprep.subr.bf16.mxu0 %v2734_v46  ;;  %3000 = vpow2.f32 %v1601_v37 }
 0x529   : > { %2737 = vmatpush3.bf16.msra.mxu0 %v2734_v46  ;;  %3002 = vpow2.f32 %v1599_v9 }
 0x52a   : > { %v3747_v27 = vpop.eup %2994 }
 0x52b   : > { %1613 = vadd.xlane.f32.xlu0 %v1612_v25  ;;  %v1609_v28 = vsel %vm1100_vm5, %v3747_v27, 0.0 }
 0x52c   : > { %1610 = vadd.xlane.f32.xlu1 %v1609_v28  ;;  %v1857_v28 = vld [vmem:[%s3915_s7 + $0x10] sm:$0xff] }
 0x52e   : > { %v3751_v30 = vpop.eup %2996 }
 0x52f   : > { %v1618_v31 = vsel %vm1100_vm5, %v3751_v30, 0.0  ;;  %v3755_v32 = vpop.eup %2998 }
 0x530   : > { %1619 = vadd.xlane.f32.xlu0 %v1618_v31  ;;  %v1615_v33 = vsel %vm1100_vm5, %v3755_v32, 0.0  ;;  %v1858_v31 = vld [vmem:[%s3915_s7 + $0x18] sm:$0xff] }
 0x532   : > { %v3766_v50 = vpop.eup %3000 }
 0x533   : > { %v1624_v51 = vsel %vm1100_vm5, %v3766_v50, 0.0 }
 0x534   : > { %1616 = vadd.xlane.f32.xlu0 %v1615_v33 }
 0x53d   : > { %2937 = vrot.lane.b32.xlu1 %v3442_v10, %s3120_s25  ;;  %v3770_v10 = vpop.eup %3002 }
 0x54a   : > { %2942 = vrot.lane.b32.xlu0 %v3447_v16, %s3120_s25  ;;  %v1621_v16 = vsel %vm1100_vm5, %v3770_v10, 0.0 }
 0x54e   : > { %2947 = vrot.lane.b32.xlu0 %v3453_v20, %s3120_s25 }
 0x561   : > { %1625 = vadd.xlane.f32.xlu1 %v1624_v51 }
 0x56d   : > { %1622 = vadd.xlane.f32.xlu0 %v1621_v16 }
 0x583   : > { %2952 = vrot.lane.b32.xlu0 %v3455_v24, %s3120_s25  ;;  %s3026_s25 = scalar_lea.vmem %s3025_s18, 2048 }
 0x5b0   : > { %v1608_v20 = vpop.xlane.xlu0 %1607 }
 0x5b4   : > { %v1605_v40 = vpop.xlane.xlu0 %1604 }
 0x5b5   : > { %3004 = vrcp.f32 %v1605_v40 }
 0x5b6   : > { %3006 = vrcp.f32 %v1608_v20 }
 0x5b8   : > { %v1614_v13 = vpop.xlane.xlu0 %1613 }
 0x5b9   : > { %v1611_v18 = vpop.xlane.xlu1 %1610 }
 0x5ba   : > { %3008 = vrcp.f32 %v1611_v18 }
 0x5bb   : > { %3010 = vrcp.f32 %v1614_v13 }
 0x5bd   : > { %v2938_v42 = vpop.permute.xlu1 %2937  ;;  %v1620_v4 = vpop.xlane.xlu0 %1619 }
 0x5be   : > { %v2940_v23 = vunpack.i.h.bf16 %v2938_v42  ;;  %v2939_v8 = vunpack.i.l.bf16 %v2938_v42 }
 0x5bf   : > { %v3005_v7 = vpop.eup %3004 }
 0x5c0   : > { %v1635_v12 = vmul.f32 %v3005_v7, %v2991_v55  ;;  %v2738_v45 = vpack.c.bf16 %v2940_v23, %v2939_v8  ;;  %v3007_v54 = vpop.eup %3006 }
 0x5c1   : > { %v1617_v41 = vpop.xlane.xlu0 %1616  ;;  %v1636_v22 = vmul.f32 %v3007_v54, %v3738_v58 }
 0x5c2   : > { %2564 = vmatprep.mubr.msk.f32.mxu0 %vm1100_vm5, %v1635_v12  ;;  %2739 = vmatprep.subr.bf16.mxu0 %v2738_v45  ;;  %3012 = vrcp.f32 %v1617_v41 }
 0x5c3   : > { %2741 = vmatpush3.bf16.msra.mxu0 %v2738_v45  ;;  %3014 = vrcp.f32 %v1620_v4 }
 0x5c4   : > { %v3009_v62 = vpop.eup %3008 }
 0x5c5   : > { %v2943_v38 = vpop.permute.xlu0 %2942  ;;  %v3011_v39 = vpop.eup %3010  ;;  %v1637_v55 = vmul.f32 %v3009_v62, %v3747_v27  ;;  %v1856_v27 = vld [vmem:[%s3915_s7 + $0x8] sm:$0xff] }
 0x5c6   : > { %v2945_v14 = vunpack.i.h.bf16 %v2943_v38  ;;  %v2944_v24 = vunpack.i.l.bf16 %v2943_v38  ;;  %v1638_v59 = vmul.f32 %v3011_v39, %v3743_v21  ;;  %v1855_v21 = vld [vmem:[%s3915_s7] sm:$0xff] }
 0x5c8   : > { %v2742_v47 = vpack.c.bf16 %v2945_v14, %v2944_v24 }
 0x5c9   : > { %v2948_v52 = vpop.permute.xlu0 %2947 }
 0x5ca   : > { %v2950_v15 = vunpack.i.h.bf16 %v2948_v52  ;;  %v2949_v1 = vunpack.i.l.bf16 %v2948_v52  ;;  %2743 = vmatprep.subr.bf16.mxu0 %v2742_v47 }
 0x5cb   : > { %2745 = vmatpush3.bf16.msra.mxu0 %v2742_v47 }
 0x5cc   : > { %v2746_v5 = vpack.c.bf16 %v2950_v15, %v2949_v1  ;;  %v3013_v44 = vpop.eup %3012 }
 0x5cd   : > { %v3015_v49 = vpop.eup %3014  ;;  %v1639_v60 = vmul.f32 %v3013_v44, %v3755_v32  ;;  %v2760_v32 = vpack.c.bf16 %v1858_v31, %v1857_v28 }
 0x5ce   : > { %2747 = vmatprep.subr.bf16.mxu0 %v2746_v5  ;;  %v1640_v56 = vmul.f32 %v3015_v49, %v3751_v30  ;;  %v2756_v30 = vpack.c.bf16 %v1856_v27, %v1855_v21 }
 0x5cf   : > { %2749 = vmatpush3.bf16.msra.mxu0 %v2746_v5 }
 0x5d0   : > { %2764 = vmatprep.subr.bf16.mxu1 %v2756_v30 }
 0x5d1   : > { %2766 = vmatpush3.bf16.msra.mxu1 %v2756_v30 }
 0x5d2   : > { %2765 = vmatprep.subr.bf16.mxu1 %v2760_v32 }
 0x5d5   : > { %2767 = vmatpush3.bf16.msra.mxu1 %v2760_v32 }
 0x5ee   : > { %v1626_v48 = vpop.xlane.xlu1 %1625 }
 0x5fa   : > { %v1623_v17 = vpop.xlane.xlu0 %1622 }
 0x5fb   : > { %3016 = vrcp.f32 %v1623_v17 }
 0x5fc   : > { %3018 = vrcp.f32 %v1626_v48 }
 0x5fe   : > { %v2953_v19 = vpop.permute.xlu0 %2952 }
 0x5ff   : > { %v2955_v43 = vunpack.i.h.bf16 %v2953_v19  ;;  %v2954_v34 = vunpack.i.l.bf16 %v2953_v19 }
 0x601   : > { %v2750_v29 = vpack.c.bf16 %v2955_v43, %v2954_v34 }
 0x603   : > { %2752 = vmatprep.subr.msk.bf16.mxu0 %vm3569_vm8, %v2750_v29 }
 0x604   : > { %2755 = vmatpush3.bf16.msk.msra.mxu0 %vm3569_vm8, %v2750_v29 }
 0x605   : > { %v3017_v46 = vpop.eup %3016  ;;  %2757 = vmatprep.subr.bf16.mxu0 %v2756_v30 }
 0x606   : > { %v3019_v58 = vpop.eup %3018  ;;  %v1641_v0 = vmul.f32 %v3017_v46, %v3770_v10 }
 0x607   : > { %2565 = vmatmul.mubr.msk.f32.vlgmr.msra.gmra.mrb[16].mxu0 %vm1100_vm5, %v1636_v22  ;;  %v1642_v25 = vmul.f32 %v3019_v58, %v3766_v50 }
 0x608   : > { %2567 = vmatprep.mubr.msk.f32.mxu0 %vm1100_vm5, %v1637_v55  ;;  %2759 = vmatpush3.bf16.msra.mxu0 %v2756_v30 }
 0x609   : > { %2761 = vmatprep.subr.bf16.mxu0 %v2760_v32 }
 0x60b   : > { %2568 = vmatmul.mubr.msk.f32.gmra.mrb[18].mxu0 %vm1100_vm5, %v1638_v59 }
 0x60c   : > { %2570 = vmatprep.mubr.msk.f32.mxu0 %vm1100_vm5, %v1639_v60  ;;  %2763 = vmatpush3.bf16.msra.mxu0 %v2760_v32 }
 0x60f   : > { %2571 = vmatmul.mubr.msk.f32.gmra.mrb[20].mxu0 %vm1100_vm5, %v1640_v56 }
 0x610   : > { %2573 = vmatprep.mubr.msk.f32.mxu0 %vm1100_vm5, %v1641_v0 }
 0x613   : > { %2574 = vmatmul.mubr.msk.f32.gmra.mrb[22].mxu0 %vm1100_vm5, %v1642_v25 }
 0x6da   : > { %v2566_v33 = vpop.f32.mrb[16].mxu0 }
 0x6db   : > { %1825 = vrot.lane.b32.xlu1 %v2566_v33, %s3121_s21  ;;  %v1776_v35 = vpop.f32.mrb[17].mxu0 }
 0x6dc   : > { %1823 = vrot.lane.b32.xlu0 %v1776_v35, %s3121_s21 }
 0x6de   : > { %v2569_v36 = vpop.f32.mrb[18].mxu0 }
 0x6df   : > { %v1786_v37 = vpop.f32.mrb[19].mxu0 }
 0x6e0   : > { %1827 = vrot.lane.b32.xlu0 %v1786_v37, %s3121_s21 }
 0x6e2   : > { %v2572_v6 = vpop.f32.mrb[20].mxu0 }
 0x6e3   : > { %v1796_v9 = vpop.f32.mrb[21].mxu0 }
 0x6e4   : > { %1833 = vrot.lane.b32.xlu0 %v2572_v6, %s3121_s21 }
 0x6e6   : > { %v2575_v50 = vpop.f32.mrb[22].mxu0 }
 0x6e7   : > { %1837 = vrot.lane.b32.xlu1 %v2575_v50, %s3121_s21  ;;  %v1806_v51 = vpop.f32.mrb[23].mxu0 }
 0x6e8   : > { %1831 = vrot.lane.b32.xlu0 %v1796_v9, %s3121_s21 }
 0x6ec   : > { %1835 = vrot.lane.b32.xlu0 %v1806_v51, %s3121_s21 }
 0x6f0   : > { %1829 = vrot.lane.b32.xlu0 %v2569_v36, %s3121_s21  ;;  %s3020_s21 = scalar_lea.vmem %s3850_s19, 1024 }
 0x6f1   : > { %p3021_p0 = scmp.ne.s32.totalorder %s3850_s19, %s3020_s21  ;;  %p3028_p5 = scmp.lt.s32.totalorder %s3026_s25, %s3020_s21 }
 0x6f3   : > { %p3022_p1 = pnand %p3021_p0, %p3231_p3  ;;  %p3029_p6 = por %p3028_p5, %p3027_p4 }
 0x6f5   : > { %p3023_p2 = pneg %p3022_p1 }
 0x6f7   : > { %p3030_p7 = pnand %p3029_p6, %p3023_p2 }
 0x74d   : > { %v1826_v10 = vpop.permute.xlu1 %1825 }
 0x74e   : > { %v1824_v16 = vpop.permute.xlu0 %1823  ;;  %v1848_v40 = vsel %vm928_vm2, %v3701_v61, %v1826_v10 }
 0x74f   : > { %v1847_v20 = vsel %vm928_vm2, %v3703_v63, %v1824_v16 }
 0x750   : > { %2584 = vmatprep.mubr.msk.f32.mxu0 %vm460_vm0, %v1847_v20 }
 0x751   : > { %2585 = vmatmul.mubr.msk.f32.vlgmr.msra.gmra.mrb[24].mxu0 %vm460_vm0, %v1848_v40 }
 0x752   : > { %v1828_v13 = vpop.permute.xlu0 %1827 }
 0x753   : > { %v1849_v18 = vsel %vm928_vm2, %v3707_v2, %v1828_v13 }
 0x754   : > { %2587 = vmatprep.mubr.msk.f32.mxu0 %vm460_vm0, %v1849_v18 }
 0x756   : > { %v1834_v42 = vpop.permute.xlu0 %1833 }
 0x757   : > { %v1852_v61 = vsel %vm928_vm2, %v3709_v57, %v1834_v42 }
 0x759   : > { %v1838_v7 = vpop.permute.xlu1 %1837 }
 0x75a   : > { %v1832_v4 = vpop.permute.xlu0 %1831  ;;  %v1854_v8 = vsel %vm928_vm2, %v3713_v11, %v1838_v7 }
 0x75b   : > { %v1851_v63 = vsel %vm928_vm2, %v3711_v3, %v1832_v4 }
 0x75c   : > { %2590 = vmatprep.mubr.msk.f32.mxu1 %vm460_vm0, %v1851_v63 }
 0x75d   : > { %2591 = vmatmul.mubr.msk.f32.vlgmr.msra.gmra.mrb[30].mxu1 %vm460_vm0, %v1852_v61 }
 0x75e   : > { %v1836_v23 = vpop.permute.xlu0 %1835 }
 0x75f   : > { %v1853_v2 = vsel %vm928_vm2, %v3715_v53, %v1836_v23  ;;  %v2221_v53 = vld [vmem:[%s3916_s8] ss:$0 sm:$0xff] }
 0x760   : > { %2593 = vmatprep.mubr.msk.f32.mxu1 %vm460_vm0, %v1853_v2 }
 0x761   : > { %2594 = vmatmul.mubr.msk.f32.gmra.mrb[32].mxu1 %vm460_vm0, %v1854_v8 }
 0x762   : > { %v1830_v3 = vpop.permute.xlu0 %1829 }
 0x763   : > { %v1850_v57 = vsel %vm928_vm2, %v3705_v26, %v1830_v3 }
 0x764   : > { %2588 = vmatmul.mubr.msk.f32.gmra.mrb[26].mxu0 %vm460_vm0, %v1850_v57 }
 0x824   : > { %v2586_v11 = vpop.f32.mrb[24].mxu0 }
 0x825   : > { %v1962_v12 = vadd.f32 %v2586_v11, %v2221_v53  ;;  %v1956_v45 = vpop.f32.mrb[25].mxu0 }
 0x826   : > { %v1957_v41 = vadd.f32 %v2221_v53, %v1956_v45 }
 0x827   : > { %1996 = vst.msk [vmem:[%s416_s24 + $0x8] sm:$0xff] %vm460_vm0, %v1962_v12 }
 0x828   : > { %1995 = vst.msk [vmem:[%s416_s24] sm:$0xff] %vm460_vm0, %v1957_v41 }
 0x830   : > { %v2592_v26 = vpop.f32.mrb[30].mxu1 }
 0x831   : > { %v1982_v38 = vadd.f32 %v2592_v26, %v2221_v53  ;;  %v1976_v14 = vpop.f32.mrb[31].mxu1 }
 0x832   : > { %v1977_v24 = vadd.f32 %v2221_v53, %v1976_v14 }
 0x833   : > { %2000 = vst.msk [vmem:[%s416_s24 + $0x28] sm:$0xff] %vm460_vm0, %v1982_v38 }
 0x834   : > { %1999 = vst.msk [vmem:[%s416_s24 + $0x20] sm:$0xff] %vm460_vm0, %v1977_v24  ;;  %v2595_v47 = vpop.f32.mrb[32].mxu1 }
 0x835   : > { %v1992_v52 = vadd.f32 %v2595_v47, %v2221_v53  ;;  %v1986_v15 = vpop.f32.mrb[33].mxu1 }
 0x836   : > { %v1987_v1 = vadd.f32 %v2221_v53, %v1986_v15 }
 0x837   : > { %2002 = vst.msk [vmem:[%s416_s24 + $0x38] sm:$0xff] %vm460_vm0, %v1992_v52  ;;  %v2589_v5 = vpop.f32.mrb[26].mxu0 }
 0x838   : > { %2001 = vst.msk [vmem:[%s416_s24 + $0x30] sm:$0xff] %vm460_vm0, %v1987_v1  ;;  %v1972_v17 = vadd.f32 %v2589_v5, %v2221_v53  ;;  %v1966_v19 = vpop.f32.mrb[27].mxu0 }
 0x839   : > { %v1967_v43 = vadd.f32 %v2221_v53, %v1966_v19 }
 0x83a   : > { %1998 = vst.msk [vmem:[%s416_s24 + $0x18] sm:$0xff] %vm460_vm0, %v1972_v17 }
 0x83b   : > { %1997 = vst.msk [vmem:[%s416_s24 + $0x10] sm:$0xff] %vm460_vm0, %v1967_v43 }
 0x83c   : > { %3033 = shalt.err (!%p3030_p7)
}
 0x83d   : > { %s3034_s23 = scalar_lea.hbm %s3848_s30, 1024  ;;  %s3038_s29 = scalar_lea.hbm %s3918_s10, 8192 }
 0x83e   : > { %p3035_p9 = scmp.ne.s32.totalorder %s3848_s30, %s3034_s23  ;;  %p3039_p12 = scmp.lt.u32.totalorder %s3848_s30, %s3918_s10 }
 0x83f   : > { %p3040_p13 = scmp.lt.u32.totalorder %s3038_s29, %s3034_s23  ;;  %p3042_p1 = scmp.lt.u32.totalorder %s3034_s23, %s3848_s30 }
 0x840   : > { %p3036_p10 = pnand %p3035_p9, %p3231_p3 }
 0x841   : > { %p3041_p0 = por %p3040_p13, %p3039_p12 }
 0x842   : > { %p3037_p11 = pneg %p3036_p10 }
 0x843   : > { %p3043_p2 = por %p3042_p1, %p3041_p0 }
 0x845   : > { %p3044_p4 = pnand %p3043_p2, %p3037_p11 }
 0x847   : > { %3047 = shalt.err (!%p3044_p4)
}
 0x848   : > { %s3123_s16 = smov 128   ;;  %s3124_s17 = smov 8  }
 0x849   : > { %2770 = dma.vmem_to_hbm [thread:$0]  (%p3231_p3), %s3850_s19, 1024, %s3848_s30, %s3856_s12, %s3123_s16, %s3123_s16, %s3124_s17  }
 0x84a PF: > { %p2776_p5 = scmp.ge.s32.totalorder %s3114_s20, 2  ;;  %s2034_s21 = sand.u32 1, %s3086_s13  }
 0x84b   : > { %s2035_s22 = scalar_lea.sflag [#allocation4], %s2034_s21 }
 0x84c   : > { %p2773_p6 = pnand %p2776_p5, %p3240_p8 }
 0x84e   : > { %3081 = dma.done.wait (!%p2773_p6), %s2035_s22, 1024  }
 0x84f   : > { %3083 = vsyncadd (!%p2773_p6), %s2035_s22, 4294966272  ;;  %s23_s20 = sadd.s32 1, %s3114_s20   ;;  %s3937_s16 = sld [smem:[#allocation6_spill]] }
 0x850   : > { %p20_p7 = scmp.ge.s32.totalorder %s23_s20, 10   ;;  %s3938_s17 = sld [smem:[#allocation7_spill]] }
 0x851   : > { %s3939_s18 = sld [smem:[#allocation8_spill]]  ;;  %s3940_s19 = sld [smem:[#allocation9_spill]] }
 0x852   : > { %s3941_s13 = smov %s3090_s14  ;;  %s3942_s14 = smov %s3094_s15 }
 0x853   : > { %s3943_s15 = smov %s3249_s11  ;;  %22 = sbr.rel (!%p20_p7) target bundleno = 8 (0x8), region = 101 }
 0x85a   :  { %2040 = vsyncpa [#allocation4], 1 }
 0x85b   :  { %2042 = vsyncpa [#allocation4 + $0x1], 1 }

</bundles_post_ra>
